<compile_context>
chip_gen: v5e
topology: v5e:2x2
jax: 0.10.0
libtpu: 0.0.40
codegen_flags: <defaults>
</compile_context>

<pallas_src>
import functools

import jax
import jax.numpy as jnp
from jax.experimental import pallas as pl
from jax.experimental.pallas import tpu as pltpu

_LANES = 128
_NEG_INF = -1e30


def _round_up(x, m):
    return (x + m - 1) // m * m


def find_lengths(messages):
    """EGG's find_lengths: index of first EOS (symbol 0) + 1, capped at max_len."""
    max_len = messages.shape[1]
    pos = jax.lax.broadcasted_iota(jnp.int32, messages.shape, 1)
    first_eos = jnp.min(jnp.where(messages == 0, pos, max_len), axis=1)
    return jnp.minimum(first_eos + 1, max_len).astype(jnp.int32)


def _rnn_receiver_kernel(n_classes, training,
                         seed_ref,                                   # SMEM scalar prefetch
                         msg_ref, len_ref, emb_ref, wih_ref, whh_ref, b_ref,
                         wa_ref, ba_ref,                             # inputs
                         out_ref):                                   # packed output slab
    tb, max_len = msg_ref.shape
    vocab = emb_ref.shape[0]
    hidden = whh_ref.shape[0]
    o_pad = wa_ref.shape[1]

    msg = msg_ref[...]                       # [TB, L] int32
    lengths = len_ref[...]                   # [TB, 1] int32 (find_lengths semantics)

    # Hoist resident weights out of the unrolled time loop.
    emb_w = emb_ref[...]                     # [V, E]
    w_ih = wih_ref[...]                      # [E, H]
    w_hh = whh_ref[...]                      # [H, H]
    bias = b_ref[...]                        # [1, H] (= b_ih + b_hh)

    v_lane = jax.lax.broadcasted_iota(jnp.int32, (tb, vocab), 1)

    # ---- RnnEncoder: embed -> tanh RNN; freeze h once t >= length (packed seq) ----
    # TODO(synk): only cell='rnn', num_layers=1 is implemented (no GRU/LSTM stack).
    h = jnp.zeros((tb, hidden), jnp.float32)
    for t in range(max_len):                 # static, fully unrolled (L is small)
        tok = msg[:, t:t + 1]                                        # [TB, 1]
        one_hot = (v_lane == tok).astype(jnp.float32)                # [TB, V]
        x_t = jnp.dot(one_hot, emb_w, preferred_element_type=jnp.float32)   # [TB, E]
        pre = (jnp.dot(x_t, w_ih, preferred_element_type=jnp.float32)
               + jnp.dot(h, w_hh, preferred_element_type=jnp.float32)
               + bias)
        h_new = jnp.tanh(pre)
        h = jnp.where(t < lengths, h_new, h)                         # [TB, H]

    # ---- agent: Linear -> Categorical (sample, log_prob, entropy) ----
    logits = jnp.dot(h, wa_ref[...], preferred_element_type=jnp.float32) + ba_ref[...]
    o_lane = jax.lax.broadcasted_iota(jnp.int32, (tb, o_pad), 1)
    valid = o_lane < n_classes
    logits = jnp.where(valid, logits, _NEG_INF)      # mask the padded class lanes

    m = jnp.max(logits, axis=-1, keepdims=True)
    ex = jnp.exp(logits - m)
    z = jnp.sum(ex, axis=-1, keepdims=True)
    log_z = jnp.log(z)
    probs = ex * pl.reciprocal(z, approx=True)       # EUP slot, frees VALU
    entropy = (m + log_z) - jnp.sum(probs * logits, axis=-1, keepdims=True)  # [TB,1]

    if training:
        # Categorical sampling via the Gumbel-max trick on the in-kernel PRNG.
        pltpu.prng_seed(seed_ref[0] + pl.program_id(0))
        raw = pltpu.bitcast(pltpu.prng_random_bits((tb, o_pad)), jnp.int32)
        u = jax.lax.shift_right_logical(raw, jnp.int32(9)).astype(jnp.float32)
        u = jnp.maximum(u * jnp.float32(1.0 / (1 << 23)), jnp.float32(1e-7))
        gumbel = -jnp.log(-jnp.log(u))
        score = jnp.where(valid, logits + gumbel, _NEG_INF)
    else:
        score = logits                                # eval: greedy argmax

    sm = jnp.max(score, axis=-1, keepdims=True)
    sample = jnp.min(jnp.where(score >= sm, o_lane, o_pad),
                     axis=-1, keepdims=True)                          # [TB,1] int32
    picked = jnp.sum(jnp.where(o_lane == sample, logits, 0.0),
                     axis=-1, keepdims=True)
    log_prob = picked - m - log_z                                     # [TB,1]

    # ---- pack (sample, log_prob, entropy) into one lane-dense slab ----
    out_lane = jax.lax.broadcasted_iota(jnp.int32, out_ref.shape, 1)
    slab = (jnp.where(out_lane == 0, sample.astype(jnp.float32), 0.0)
            + jnp.where(out_lane == 1, log_prob, 0.0)
            + jnp.where(out_lane == 2, entropy, 0.0))
    out_ref[...] = slab


@functools.partial(jax.jit, static_argnames=("n_classes", "tile_b", "training"))
def _forward_impl(params, message, lengths, seed, *, n_classes, tile_b, training):
    b, max_len = message.shape
    b_pad = _round_up(b, tile_b)
    if b_pad != b:
        message = jnp.pad(message, ((0, b_pad - b), (0, 0)))
        lengths = jnp.pad(lengths, ((0, b_pad - b), (0, 0)), constant_values=1)

    emb, w_ih, w_hh, bias, w_a, b_a = (params[k] for k in
                                       ("emb", "w_ih", "w_hh", "bias", "w_a", "b_a"))
    v_pad, e_pad = emb.shape
    h_pad = w_hh.shape[0]
    o_pad = w_a.shape[1]

    res = lambda i, s: (0, 0)      # resident weights (same block every step)
    bat = lambda i, s: (i, 0)      # batch-tiled arrays

    kernel = functools.partial(_rnn_receiver_kernel, n_classes, training)

    slab = pl.pallas_call(
        kernel,
        out_shape=jax.ShapeDtypeStruct((b_pad, _LANES), jnp.float32),
        grid_spec=pltpu.PrefetchScalarGridSpec(
            num_scalar_prefetch=1,                       # seed -> SMEM scalar path
            grid=(b_pad // tile_b,),
            in_specs=[
                pl.BlockSpec((tile_b, max_len), bat),    # message
                pl.BlockSpec((tile_b, 1), bat),          # lengths
                pl.BlockSpec((v_pad, e_pad), res),       # embedding
                pl.BlockSpec((e_pad, h_pad), res),       # W_ih
                pl.BlockSpec((h_pad, h_pad), res),       # W_hh
                pl.BlockSpec((1, h_pad), res),           # b_ih + b_hh
                pl.BlockSpec((h_pad, o_pad), res),       # agent W
                pl.BlockSpec((1, o_pad), res),           # agent b
            ],
            out_specs=pl.BlockSpec((tile_b, _LANES), bat),
        ),
        compiler_params=pltpu.CompilerParams(
            dimension_semantics=("parallel",),           # dual-TC on v7x
            vmem_limit_bytes=32 * 1024 * 1024,
        ),
    )(seed, message, lengths, emb, w_ih, w_hh, bias, w_a, b_a)

    sample = slab[:b, 0].astype(jnp.int32)
    log_prob = slab[:b, 1]
    entropy = slab[:b, 2]
    return sample, log_prob, entropy


class RnnReceiverReinforce:
    """JAX/Pallas port of EGG's RnnReceiverReinforce forward pass.

    cell='rnn', num_layers=1, agent = ReinforceWrapper(Linear(hidden, n_classes)).
    Weights are stored zero-padded to 128-lane multiples (lane-dense kernel tiles).
    For production batches use tile_b >= 128 (256 on v6e/v7x); bf16 weights are a
    further option when scaling up (kept f32 here for the tiny demo).
    """

    def __init__(self, params, n_classes, tile_b=128):
        self.params = params
        self.n_classes = int(n_classes)
        self.tile_b = int(tile_b)
        self.training = True

    def train(self, mode=True):
        self.training = bool(mode)
        return self

    def eval(self):
        return self.train(False)

    def forward(self, message, input=None, aux_input=None, lengths=None, seed=0):
        # TODO(synk): `input` / `aux_input` are unused by the canonical Linear
        # agent (matches EGG's simple receivers); plumb them through if needed.
        message = jnp.asarray(message, jnp.int32)
        if lengths is None:
            lengths = find_lengths(message)
        lengths = jnp.asarray(lengths, jnp.int32).reshape(-1, 1)
        seed_arr = jnp.asarray([seed], jnp.int32)
        return _forward_impl(self.params, message, lengths, seed_arr,
                             n_classes=self.n_classes, tile_b=self.tile_b,
                             training=self.training)


def make_params(key, vocab_size, embed_dim, hidden_size, n_classes):
    """Padded (lane-dense) parameters; real sub-blocks random, padding zero."""
    v_pad = _round_up(vocab_size, _LANES)
    e_pad = _round_up(embed_dim, _LANES)
    h_pad = _round_up(hidden_size, _LANES)
    o_pad = _round_up(n_classes, _LANES)

    def padded(k, real_shape, pad_shape, scale=0.1):
        w = (scale * jax.random.normal(k, real_shape)).astype(jnp.float32)
        return jnp.zeros(pad_shape, jnp.float32).at[:real_shape[0], :real_shape[1]].set(w)

    ks = jax.random.split(key, 6)
    return {
        "emb":  padded(ks[0], (vocab_size, embed_dim), (v_pad, e_pad)),
        "w_ih": padded(ks[1], (embed_dim, hidden_size), (e_pad, h_pad)),
        "w_hh": padded(ks[2], (hidden_size, hidden_size), (h_pad, h_pad)),
        "bias": padded(ks[3], (1, hidden_size), (1, h_pad)),   # b_ih + b_hh
        "w_a":  padded(ks[4], (hidden_size, n_classes), (h_pad, o_pad)),
        "b_a":  padded(ks[5], (1, n_classes), (1, o_pad)),
    }


if __name__ == "__main__":
    vocab_size, embed_dim, hidden_size, n_classes = 10, 32, 64, 16
    batch, max_len = 16, 8

    key = jax.random.PRNGKey(0)
    k_msg, k_par = jax.random.split(key)

    # Random variable-length messages over {0..vocab-1}; symbol 0 is EOS.
    message = jax.random.randint(k_msg, (batch, max_len), 0, vocab_size, jnp.int32)
    params = make_params(k_par, vocab_size, embed_dim, hidden_size, n_classes)

    receiver = RnnReceiverReinforce(params, n_classes=n_classes, tile_b=8).eval()
    sample, log_prob, entropy = receiver.forward(message)
    jax.block_until_ready((sample, log_prob, entropy))
    assert sample.shape == (batch,)
    assert log_prob.shape == (batch,)
    assert entropy.shape == (batch,)
    print("KERNEL_OK")
</pallas_src>

<mosaic_0001>
module attributes {stable_mosaic.version = 11 : i64} {
  func.func @_rnn_receiver_kernel(%arg0: i32, %arg1: memref<1xi32, #tpu.memory_space<smem>>, %arg2: memref<8x8xi32, #tpu.memory_space<vmem>>, %arg3: memref<8x1xi32, #tpu.memory_space<vmem>>, %arg4: memref<128x128xf32, #tpu.memory_space<vmem>>, %arg5: memref<128x128xf32, #tpu.memory_space<vmem>>, %arg6: memref<128x128xf32, #tpu.memory_space<vmem>>, %arg7: memref<1x128xf32, #tpu.memory_space<vmem>>, %arg8: memref<128x128xf32, #tpu.memory_space<vmem>>, %arg9: memref<1x128xf32, #tpu.memory_space<vmem>>, %arg10: memref<8x128xf32, #tpu.memory_space<vmem>>) attributes {dimension_semantics = [#tpu.dimension_semantics<parallel>], iteration_bounds = array<i64: 2>, scalar_prefetch = 1 : i64, scratch_operands = 0 : i64, tpu.core_type = #tpu.core_type<tc>, window_params = [{transform_indices = @transform_0, window_bounds = array<i64: 8, 8>}, {transform_indices = @transform_1, window_bounds = array<i64: 8, 1>}, {pipeline_mode = #tpu.pipeline_mode<synchronous>, transform_indices = @transform_2, window_bounds = array<i64: 128, 128>}, {pipeline_mode = #tpu.pipeline_mode<synchronous>, transform_indices = @transform_3, window_bounds = array<i64: 128, 128>}, {pipeline_mode = #tpu.pipeline_mode<synchronous>, transform_indices = @transform_4, window_bounds = array<i64: 128, 128>}, {pipeline_mode = #tpu.pipeline_mode<synchronous>, transform_indices = @transform_5, window_bounds = array<i64: 1, 128>}, {pipeline_mode = #tpu.pipeline_mode<synchronous>, transform_indices = @transform_6, window_bounds = array<i64: 128, 128>}, {pipeline_mode = #tpu.pipeline_mode<synchronous>, transform_indices = @transform_7, window_bounds = array<i64: 1, 128>}, {transform_indices = @transform_8, window_bounds = array<i64: 8, 128>}]} {
    %c0 = arith.constant 0 : index
    %c0_0 = arith.constant 0 : index
    %0 = vector.load %arg2[%c0, %c0_0] : memref<8x8xi32, #tpu.memory_space<vmem>>, vector<8x8xi32>
    %c0_1 = arith.constant 0 : index
    %c0_2 = arith.constant 0 : index
    %1 = vector.load %arg3[%c0_1, %c0_2] : memref<8x1xi32, #tpu.memory_space<vmem>>, vector<8x1xi32>
    %c0_3 = arith.constant 0 : index
    %c0_4 = arith.constant 0 : index
    %2 = vector.load %arg4[%c0_3, %c0_4] : memref<128x128xf32, #tpu.memory_space<vmem>>, vector<128x128xf32>
    %c0_5 = arith.constant 0 : index
    %c0_6 = arith.constant 0 : index
    %3 = vector.load %arg5[%c0_5, %c0_6] : memref<128x128xf32, #tpu.memory_space<vmem>>, vector<128x128xf32>
    %c0_7 = arith.constant 0 : index
    %c0_8 = arith.constant 0 : index
    %4 = vector.load %arg6[%c0_7, %c0_8] : memref<128x128xf32, #tpu.memory_space<vmem>>, vector<128x128xf32>
    %c0_9 = arith.constant 0 : index
    %c0_10 = arith.constant 0 : index
    %5 = vector.load %arg7[%c0_9, %c0_10] : memref<1x128xf32, #tpu.memory_space<vmem>>, vector<1x128xf32>
    %6 = tpu.iota {dimensions = array<i32: 1>} : vector<8x128xi32>
    %cst = arith.constant 0.000000e+00 : f32
    %7 = vector.broadcast %cst : f32 to vector<8x128xf32>
    %8 = vector.extract_strided_slice %0 {offsets = [0, 0], sizes = [8, 1], strides = [1, 1]} : vector<8x8xi32> to vector<8x1xi32>
    %9 = vector.broadcast %8 : vector<8x1xi32> to vector<8x128xi32>
    %10 = arith.cmpi eq, %6, %9 : vector<8x128xi32>
    %11 = arith.extui %10 : vector<8x128xi1> to vector<8x128xi32>
    %12 = arith.sitofp %11 : vector<8x128xi32> to vector<8x128xf32>
    %cst_11 = arith.constant dense<0.000000e+00> : vector<8x128xf32>
    %13 = tpu.matmul %12, %2, %cst_11 {dimension_numbers = #tpu.dot_dimension_numbers<[1], [0], [0], [1], [0, 0, 1, 1], [], []>} : vector<8x128xf32>, vector<128x128xf32>, vector<8x128xf32> -> vector<8x128xf32>
    %cst_12 = arith.constant dense<0.000000e+00> : vector<8x128xf32>
    %14 = tpu.matmul %13, %3, %cst_12 {dimension_numbers = #tpu.dot_dimension_numbers<[1], [0], [0], [1], [0, 0, 1, 1], [], []>} : vector<8x128xf32>, vector<128x128xf32>, vector<8x128xf32> -> vector<8x128xf32>
    %cst_13 = arith.constant dense<0.000000e+00> : vector<8x128xf32>
    %15 = tpu.matmul %7, %4, %cst_13 {dimension_numbers = #tpu.dot_dimension_numbers<[1], [0], [0], [1], [0, 0, 1, 1], [], []>} : vector<8x128xf32>, vector<128x128xf32>, vector<8x128xf32> -> vector<8x128xf32>
    %16 = arith.addf %14, %15 : vector<8x128xf32>
    %17 = vector.broadcast %5 : vector<1x128xf32> to vector<8x128xf32>
    %18 = arith.addf %16, %17 : vector<8x128xf32>
    %19 = math.tanh %18 : vector<8x128xf32>
    %c0_i32 = arith.constant 0 : i32
    %20 = vector.broadcast %c0_i32 : i32 to vector<8x1xi32>
    %21 = arith.cmpi sgt, %1, %20 : vector<8x1xi32>
    %22 = vector.shape_cast %21 : vector<8x1xi1> to vector<8x1xi1>
    %23 = vector.broadcast %22 : vector<8x1xi1> to vector<8x128xi1>
    %24 = arith.select %23, %19, %7 : vector<8x128xi1>, vector<8x128xf32>
    %25 = vector.extract_strided_slice %0 {offsets = [0, 1], sizes = [8, 1], strides = [1, 1]} : vector<8x8xi32> to vector<8x1xi32>
    %26 = vector.broadcast %25 : vector<8x1xi32> to vector<8x128xi32>
    %27 = arith.cmpi eq, %6, %26 : vector<8x128xi32>
    %28 = arith.extui %27 : vector<8x128xi1> to vector<8x128xi32>
    %29 = arith.sitofp %28 : vector<8x128xi32> to vector<8x128xf32>
    %cst_14 = arith.constant dense<0.000000e+00> : vector<8x128xf32>
    %30 = tpu.matmul %29, %2, %cst_14 {dimension_numbers = #tpu.dot_dimension_numbers<[1], [0], [0], [1], [0, 0, 1, 1], [], []>} : vector<8x128xf32>, vector<128x128xf32>, vector<8x128xf32> -> vector<8x128xf32>
    %cst_15 = arith.constant dense<0.000000e+00> : vector<8x128xf32>
    %31 = tpu.matmul %30, %3, %cst_15 {dimension_numbers = #tpu.dot_dimension_numbers<[1], [0], [0], [1], [0, 0, 1, 1], [], []>} : vector<8x128xf32>, vector<128x128xf32>, vector<8x128xf32> -> vector<8x128xf32>
    %cst_16 = arith.constant dense<0.000000e+00> : vector<8x128xf32>
    %32 = tpu.matmul %24, %4, %cst_16 {dimension_numbers = #tpu.dot_dimension_numbers<[1], [0], [0], [1], [0, 0, 1, 1], [], []>} : vector<8x128xf32>, vector<128x128xf32>, vector<8x128xf32> -> vector<8x128xf32>
    %33 = arith.addf %31, %32 : vector<8x128xf32>
    %34 = vector.broadcast %5 : vector<1x128xf32> to vector<8x128xf32>
    %35 = arith.addf %33, %34 : vector<8x128xf32>
    %36 = math.tanh %35 : vector<8x128xf32>
    %c1_i32 = arith.constant 1 : i32
    %37 = vector.broadcast %c1_i32 : i32 to vector<8x1xi32>
    %38 = arith.cmpi sgt, %1, %37 : vector<8x1xi32>
    %39 = vector.shape_cast %38 : vector<8x1xi1> to vector<8x1xi1>
    %40 = vector.broadcast %39 : vector<8x1xi1> to vector<8x128xi1>
    %41 = arith.select %40, %36, %24 : vector<8x128xi1>, vector<8x128xf32>
    %42 = vector.extract_strided_slice %0 {offsets = [0, 2], sizes = [8, 1], strides = [1, 1]} : vector<8x8xi32> to vector<8x1xi32>
    %43 = vector.broadcast %42 : vector<8x1xi32> to vector<8x128xi32>
    %44 = arith.cmpi eq, %6, %43 : vector<8x128xi32>
    %45 = arith.extui %44 : vector<8x128xi1> to vector<8x128xi32>
    %46 = arith.sitofp %45 : vector<8x128xi32> to vector<8x128xf32>
    %cst_17 = arith.constant dense<0.000000e+00> : vector<8x128xf32>
    %47 = tpu.matmul %46, %2, %cst_17 {dimension_numbers = #tpu.dot_dimension_numbers<[1], [0], [0], [1], [0, 0, 1, 1], [], []>} : vector<8x128xf32>, vector<128x128xf32>, vector<8x128xf32> -> vector<8x128xf32>
    %cst_18 = arith.constant dense<0.000000e+00> : vector<8x128xf32>
    %48 = tpu.matmul %47, %3, %cst_18 {dimension_numbers = #tpu.dot_dimension_numbers<[1], [0], [0], [1], [0, 0, 1, 1], [], []>} : vector<8x128xf32>, vector<128x128xf32>, vector<8x128xf32> -> vector<8x128xf32>
    %cst_19 = arith.constant dense<0.000000e+00> : vector<8x128xf32>
    %49 = tpu.matmul %41, %4, %cst_19 {dimension_numbers = #tpu.dot_dimension_numbers<[1], [0], [0], [1], [0, 0, 1, 1], [], []>} : vector<8x128xf32>, vector<128x128xf32>, vector<8x128xf32> -> vector<8x128xf32>
    %50 = arith.addf %48, %49 : vector<8x128xf32>
    %51 = vector.broadcast %5 : vector<1x128xf32> to vector<8x128xf32>
    %52 = arith.addf %50, %51 : vector<8x128xf32>
    %53 = math.tanh %52 : vector<8x128xf32>
    %c2_i32 = arith.constant 2 : i32
    %54 = vector.broadcast %c2_i32 : i32 to vector<8x1xi32>
    %55 = arith.cmpi sgt, %1, %54 : vector<8x1xi32>
    %56 = vector.shape_cast %55 : vector<8x1xi1> to vector<8x1xi1>
    %57 = vector.broadcast %56 : vector<8x1xi1> to vector<8x128xi1>
    %58 = arith.select %57, %53, %41 : vector<8x128xi1>, vector<8x128xf32>
    %59 = vector.extract_strided_slice %0 {offsets = [0, 3], sizes = [8, 1], strides = [1, 1]} : vector<8x8xi32> to vector<8x1xi32>
    %60 = vector.broadcast %59 : vector<8x1xi32> to vector<8x128xi32>
    %61 = arith.cmpi eq, %6, %60 : vector<8x128xi32>
    %62 = arith.extui %61 : vector<8x128xi1> to vector<8x128xi32>
    %63 = arith.sitofp %62 : vector<8x128xi32> to vector<8x128xf32>
    %cst_20 = arith.constant dense<0.000000e+00> : vector<8x128xf32>
    %64 = tpu.matmul %63, %2, %cst_20 {dimension_numbers = #tpu.dot_dimension_numbers<[1], [0], [0], [1], [0, 0, 1, 1], [], []>} : vector<8x128xf32>, vector<128x128xf32>, vector<8x128xf32> -> vector<8x128xf32>
    %cst_21 = arith.constant dense<0.000000e+00> : vector<8x128xf32>
    %65 = tpu.matmul %64, %3, %cst_21 {dimension_numbers = #tpu.dot_dimension_numbers<[1], [0], [0], [1], [0, 0, 1, 1], [], []>} : vector<8x128xf32>, vector<128x128xf32>, vector<8x128xf32> -> vector<8x128xf32>
    %cst_22 = arith.constant dense<0.000000e+00> : vector<8x128xf32>
    %66 = tpu.matmul %58, %4, %cst_22 {dimension_numbers = #tpu.dot_dimension_numbers<[1], [0], [0], [1], [0, 0, 1, 1], [], []>} : vector<8x128xf32>, vector<128x128xf32>, vector<8x128xf32> -> vector<8x128xf32>
    %67 = arith.addf %65, %66 : vector<8x128xf32>
    %68 = vector.broadcast %5 : vector<1x128xf32> to vector<8x128xf32>
    %69 = arith.addf %67, %68 : vector<8x128xf32>
    %70 = math.tanh %69 : vector<8x128xf32>
    %c3_i32 = arith.constant 3 : i32
    %71 = vector.broadcast %c3_i32 : i32 to vector<8x1xi32>
    %72 = arith.cmpi sgt, %1, %71 : vector<8x1xi32>
    %73 = vector.shape_cast %72 : vector<8x1xi1> to vector<8x1xi1>
    %74 = vector.broadcast %73 : vector<8x1xi1> to vector<8x128xi1>
    %75 = arith.select %74, %70, %58 : vector<8x128xi1>, vector<8x128xf32>
    %76 = vector.extract_strided_slice %0 {offsets = [0, 4], sizes = [8, 1], strides = [1, 1]} : vector<8x8xi32> to vector<8x1xi32>
    %77 = vector.broadcast %76 : vector<8x1xi32> to vector<8x128xi32>
    %78 = arith.cmpi eq, %6, %77 : vector<8x128xi32>
    %79 = arith.extui %78 : vector<8x128xi1> to vector<8x128xi32>
    %80 = arith.sitofp %79 : vector<8x128xi32> to vector<8x128xf32>
    %cst_23 = arith.constant dense<0.000000e+00> : vector<8x128xf32>
    %81 = tpu.matmul %80, %2, %cst_23 {dimension_numbers = #tpu.dot_dimension_numbers<[1], [0], [0], [1], [0, 0, 1, 1], [], []>} : vector<8x128xf32>, vector<128x128xf32>, vector<8x128xf32> -> vector<8x128xf32>
    %cst_24 = arith.constant dense<0.000000e+00> : vector<8x128xf32>
    %82 = tpu.matmul %81, %3, %cst_24 {dimension_numbers = #tpu.dot_dimension_numbers<[1], [0], [0], [1], [0, 0, 1, 1], [], []>} : vector<8x128xf32>, vector<128x128xf32>, vector<8x128xf32> -> vector<8x128xf32>
    %cst_25 = arith.constant dense<0.000000e+00> : vector<8x128xf32>
    %83 = tpu.matmul %75, %4, %cst_25 {dimension_numbers = #tpu.dot_dimension_numbers<[1], [0], [0], [1], [0, 0, 1, 1], [], []>} : vector<8x128xf32>, vector<128x128xf32>, vector<8x128xf32> -> vector<8x128xf32>
    %84 = arith.addf %82, %83 : vector<8x128xf32>
    %85 = vector.broadcast %5 : vector<1x128xf32> to vector<8x128xf32>
    %86 = arith.addf %84, %85 : vector<8x128xf32>
    %87 = math.tanh %86 : vector<8x128xf32>
    %c4_i32 = arith.constant 4 : i32
    %88 = vector.broadcast %c4_i32 : i32 to vector<8x1xi32>
    %89 = arith.cmpi sgt, %1, %88 : vector<8x1xi32>
    %90 = vector.shape_cast %89 : vector<8x1xi1> to vector<8x1xi1>
    %91 = vector.broadcast %90 : vector<8x1xi1> to vector<8x128xi1>
    %92 = arith.select %91, %87, %75 : vector<8x128xi1>, vector<8x128xf32>
    %93 = vector.extract_strided_slice %0 {offsets = [0, 5], sizes = [8, 1], strides = [1, 1]} : vector<8x8xi32> to vector<8x1xi32>
    %94 = vector.broadcast %93 : vector<8x1xi32> to vector<8x128xi32>
    %95 = arith.cmpi eq, %6, %94 : vector<8x128xi32>
    %96 = arith.extui %95 : vector<8x128xi1> to vector<8x128xi32>
    %97 = arith.sitofp %96 : vector<8x128xi32> to vector<8x128xf32>
    %cst_26 = arith.constant dense<0.000000e+00> : vector<8x128xf32>
    %98 = tpu.matmul %97, %2, %cst_26 {dimension_numbers = #tpu.dot_dimension_numbers<[1], [0], [0], [1], [0, 0, 1, 1], [], []>} : vector<8x128xf32>, vector<128x128xf32>, vector<8x128xf32> -> vector<8x128xf32>
    %cst_27 = arith.constant dense<0.000000e+00> : vector<8x128xf32>
    %99 = tpu.matmul %98, %3, %cst_27 {dimension_numbers = #tpu.dot_dimension_numbers<[1], [0], [0], [1], [0, 0, 1, 1], [], []>} : vector<8x128xf32>, vector<128x128xf32>, vector<8x128xf32> -> vector<8x128xf32>
    %cst_28 = arith.constant dense<0.000000e+00> : vector<8x128xf32>
    %100 = tpu.matmul %92, %4, %cst_28 {dimension_numbers = #tpu.dot_dimension_numbers<[1], [0], [0], [1], [0, 0, 1, 1], [], []>} : vector<8x128xf32>, vector<128x128xf32>, vector<8x128xf32> -> vector<8x128xf32>
    %101 = arith.addf %99, %100 : vector<8x128xf32>
    %102 = vector.broadcast %5 : vector<1x128xf32> to vector<8x128xf32>
    %103 = arith.addf %101, %102 : vector<8x128xf32>
    %104 = math.tanh %103 : vector<8x128xf32>
    %c5_i32 = arith.constant 5 : i32
    %105 = vector.broadcast %c5_i32 : i32 to vector<8x1xi32>
    %106 = arith.cmpi sgt, %1, %105 : vector<8x1xi32>
    %107 = vector.shape_cast %106 : vector<8x1xi1> to vector<8x1xi1>
    %108 = vector.broadcast %107 : vector<8x1xi1> to vector<8x128xi1>
    %109 = arith.select %108, %104, %92 : vector<8x128xi1>, vector<8x128xf32>
    %110 = vector.extract_strided_slice %0 {offsets = [0, 6], sizes = [8, 1], strides = [1, 1]} : vector<8x8xi32> to vector<8x1xi32>
    %111 = vector.broadcast %110 : vector<8x1xi32> to vector<8x128xi32>
    %112 = arith.cmpi eq, %6, %111 : vector<8x128xi32>
    %113 = arith.extui %112 : vector<8x128xi1> to vector<8x128xi32>
    %114 = arith.sitofp %113 : vector<8x128xi32> to vector<8x128xf32>
    %cst_29 = arith.constant dense<0.000000e+00> : vector<8x128xf32>
    %115 = tpu.matmul %114, %2, %cst_29 {dimension_numbers = #tpu.dot_dimension_numbers<[1], [0], [0], [1], [0, 0, 1, 1], [], []>} : vector<8x128xf32>, vector<128x128xf32>, vector<8x128xf32> -> vector<8x128xf32>
    %cst_30 = arith.constant dense<0.000000e+00> : vector<8x128xf32>
    %116 = tpu.matmul %115, %3, %cst_30 {dimension_numbers = #tpu.dot_dimension_numbers<[1], [0], [0], [1], [0, 0, 1, 1], [], []>} : vector<8x128xf32>, vector<128x128xf32>, vector<8x128xf32> -> vector<8x128xf32>
    %cst_31 = arith.constant dense<0.000000e+00> : vector<8x128xf32>
    %117 = tpu.matmul %109, %4, %cst_31 {dimension_numbers = #tpu.dot_dimension_numbers<[1], [0], [0], [1], [0, 0, 1, 1], [], []>} : vector<8x128xf32>, vector<128x128xf32>, vector<8x128xf32> -> vector<8x128xf32>
    %118 = arith.addf %116, %117 : vector<8x128xf32>
    %119 = vector.broadcast %5 : vector<1x128xf32> to vector<8x128xf32>
    %120 = arith.addf %118, %119 : vector<8x128xf32>
    %121 = math.tanh %120 : vector<8x128xf32>
    %c6_i32 = arith.constant 6 : i32
    %122 = vector.broadcast %c6_i32 : i32 to vector<8x1xi32>
    %123 = arith.cmpi sgt, %1, %122 : vector<8x1xi32>
    %124 = vector.shape_cast %123 : vector<8x1xi1> to vector<8x1xi1>
    %125 = vector.broadcast %124 : vector<8x1xi1> to vector<8x128xi1>
    %126 = arith.select %125, %121, %109 : vector<8x128xi1>, vector<8x128xf32>
    %127 = vector.extract_strided_slice %0 {offsets = [0, 7], sizes = [8, 1], strides = [1, 1]} : vector<8x8xi32> to vector<8x1xi32>
    %128 = vector.broadcast %127 : vector<8x1xi32> to vector<8x128xi32>
    %129 = arith.cmpi eq, %6, %128 : vector<8x128xi32>
    %130 = arith.extui %129 : vector<8x128xi1> to vector<8x128xi32>
    %131 = arith.sitofp %130 : vector<8x128xi32> to vector<8x128xf32>
    %cst_32 = arith.constant dense<0.000000e+00> : vector<8x128xf32>
    %132 = tpu.matmul %131, %2, %cst_32 {dimension_numbers = #tpu.dot_dimension_numbers<[1], [0], [0], [1], [0, 0, 1, 1], [], []>} : vector<8x128xf32>, vector<128x128xf32>, vector<8x128xf32> -> vector<8x128xf32>
    %cst_33 = arith.constant dense<0.000000e+00> : vector<8x128xf32>
    %133 = tpu.matmul %132, %3, %cst_33 {dimension_numbers = #tpu.dot_dimension_numbers<[1], [0], [0], [1], [0, 0, 1, 1], [], []>} : vector<8x128xf32>, vector<128x128xf32>, vector<8x128xf32> -> vector<8x128xf32>
    %cst_34 = arith.constant dense<0.000000e+00> : vector<8x128xf32>
    %134 = tpu.matmul %126, %4, %cst_34 {dimension_numbers = #tpu.dot_dimension_numbers<[1], [0], [0], [1], [0, 0, 1, 1], [], []>} : vector<8x128xf32>, vector<128x128xf32>, vector<8x128xf32> -> vector<8x128xf32>
    %135 = arith.addf %133, %134 : vector<8x128xf32>
    %136 = vector.broadcast %5 : vector<1x128xf32> to vector<8x128xf32>
    %137 = arith.addf %135, %136 : vector<8x128xf32>
    %138 = math.tanh %137 : vector<8x128xf32>
    %c7_i32 = arith.constant 7 : i32
    %139 = vector.broadcast %c7_i32 : i32 to vector<8x1xi32>
    %140 = arith.cmpi sgt, %1, %139 : vector<8x1xi32>
    %141 = vector.shape_cast %140 : vector<8x1xi1> to vector<8x1xi1>
    %142 = vector.broadcast %141 : vector<8x1xi1> to vector<8x128xi1>
    %143 = arith.select %142, %138, %126 : vector<8x128xi1>, vector<8x128xf32>
    %c0_35 = arith.constant 0 : index
    %c0_36 = arith.constant 0 : index
    %144 = vector.load %arg8[%c0_35, %c0_36] : memref<128x128xf32, #tpu.memory_space<vmem>>, vector<128x128xf32>
    %cst_37 = arith.constant dense<0.000000e+00> : vector<8x128xf32>
    %145 = tpu.matmul %143, %144, %cst_37 {dimension_numbers = #tpu.dot_dimension_numbers<[1], [0], [0], [1], [0, 0, 1, 1], [], []>} : vector<8x128xf32>, vector<128x128xf32>, vector<8x128xf32> -> vector<8x128xf32>
    %c0_38 = arith.constant 0 : index
    %c0_39 = arith.constant 0 : index
    %146 = vector.load %arg9[%c0_38, %c0_39] : memref<1x128xf32, #tpu.memory_space<vmem>>, vector<1x128xf32>
    %147 = vector.broadcast %146 : vector<1x128xf32> to vector<8x128xf32>
    %148 = arith.addf %145, %147 : vector<8x128xf32>
    %149 = tpu.iota {dimensions = array<i32: 1>} : vector<8x128xi32>
    %c16_i32 = arith.constant 16 : i32
    %150 = vector.broadcast %c16_i32 : i32 to vector<8x128xi32>
    %151 = arith.cmpi slt, %149, %150 : vector<8x128xi32>
    %cst_40 = arith.constant -1.000000e+30 : f32
    %152 = vector.broadcast %cst_40 : f32 to vector<8x128xf32>
    %153 = arith.select %151, %148, %152 : vector<8x128xi1>, vector<8x128xf32>
    %cst_41 = arith.constant dense<0xFF800000> : vector<8xf32>
    %154 = vector.multi_reduction <maximumf>, %153, %cst_41 [1] : vector<8x128xf32> to vector<8xf32>
    %155 = vector.shape_cast %154 : vector<8xf32> to vector<8x1xf32>
    %156 = vector.broadcast %155 : vector<8x1xf32> to vector<8x128xf32>
    %157 = arith.subf %153, %156 : vector<8x128xf32>
    %158 = math.exp %157 : vector<8x128xf32>
    %cst_42 = arith.constant dense<0.000000e+00> : vector<8xf32>
    %159 = vector.multi_reduction <add>, %158, %cst_42 [1] : vector<8x128xf32> to vector<8xf32>
    %160 = vector.shape_cast %159 : vector<8xf32> to vector<8x1xf32>
    %161 = math.log %160 : vector<8x1xf32>
    %162 = tpu.reciprocal %160 {approx = true} : vector<8x1xf32> -> vector<8x1xf32>
    %163 = vector.broadcast %162 : vector<8x1xf32> to vector<8x128xf32>
    %164 = arith.mulf %158, %163 : vector<8x128xf32>
    %165 = arith.addf %155, %161 : vector<8x1xf32>
    %166 = arith.mulf %164, %153 : vector<8x128xf32>
    %cst_43 = arith.constant dense<0.000000e+00> : vector<8xf32>
    %167 = vector.multi_reduction <add>, %166, %cst_43 [1] : vector<8x128xf32> to vector<8xf32>
    %168 = vector.shape_cast %167 : vector<8xf32> to vector<8x1xf32>
    %169 = arith.subf %165, %168 : vector<8x1xf32>
    %cst_44 = arith.constant dense<0xFF800000> : vector<8xf32>
    %170 = vector.multi_reduction <maximumf>, %153, %cst_44 [1] : vector<8x128xf32> to vector<8xf32>
    %171 = vector.shape_cast %170 : vector<8xf32> to vector<8x1xf32>
    %172 = vector.broadcast %171 : vector<8x1xf32> to vector<8x128xf32>
    %173 = arith.cmpf oge, %153, %172 : vector<8x128xf32>
    %c128_i32 = arith.constant 128 : i32
    %174 = vector.broadcast %c128_i32 : i32 to vector<8x128xi32>
    %175 = arith.select %173, %149, %174 : vector<8x128xi1>, vector<8x128xi32>
    %cst_45 = arith.constant dense<2147483647> : vector<8xi32>
    %176 = vector.multi_reduction <minsi>, %175, %cst_45 [1] : vector<8x128xi32> to vector<8xi32>
    %177 = vector.shape_cast %176 : vector<8xi32> to vector<8x1xi32>
    %178 = vector.broadcast %177 : vector<8x1xi32> to vector<8x128xi32>
    %179 = arith.cmpi eq, %149, %178 : vector<8x128xi32>
    %cst_46 = arith.constant 0.000000e+00 : f32
    %180 = vector.broadcast %cst_46 : f32 to vector<8x128xf32>
    %181 = arith.select %179, %153, %180 : vector<8x128xi1>, vector<8x128xf32>
    %cst_47 = arith.constant dense<0.000000e+00> : vector<8xf32>
    %182 = vector.multi_reduction <add>, %181, %cst_47 [1] : vector<8x128xf32> to vector<8xf32>
    %183 = vector.shape_cast %182 : vector<8xf32> to vector<8x1xf32>
    %184 = arith.subf %183, %155 : vector<8x1xf32>
    %185 = arith.subf %184, %161 : vector<8x1xf32>
    %186 = tpu.iota {dimensions = array<i32: 1>} : vector<8x128xi32>
    %c0_i32_48 = arith.constant 0 : i32
    %187 = vector.broadcast %c0_i32_48 : i32 to vector<8x128xi32>
    %188 = arith.cmpi eq, %186, %187 : vector<8x128xi32>
    %189 = arith.sitofp %177 : vector<8x1xi32> to vector<8x1xf32>
    %cst_49 = arith.constant 0.000000e+00 : f32
    %190 = vector.shape_cast %189 : vector<8x1xf32> to vector<8x1xf32>
    %191 = vector.broadcast %190 : vector<8x1xf32> to vector<8x128xf32>
    %192 = vector.broadcast %cst_49 : f32 to vector<8x128xf32>
    %193 = arith.select %188, %191, %192 : vector<8x128xi1>, vector<8x128xf32>
    %c1_i32_50 = arith.constant 1 : i32
    %194 = vector.broadcast %c1_i32_50 : i32 to vector<8x128xi32>
    %195 = arith.cmpi eq, %186, %194 : vector<8x128xi32>
    %cst_51 = arith.constant 0.000000e+00 : f32
    %196 = vector.shape_cast %185 : vector<8x1xf32> to vector<8x1xf32>
    %197 = vector.broadcast %196 : vector<8x1xf32> to vector<8x128xf32>
    %198 = vector.broadcast %cst_51 : f32 to vector<8x128xf32>
    %199 = arith.select %195, %197, %198 : vector<8x128xi1>, vector<8x128xf32>
    %200 = arith.addf %193, %199 : vector<8x128xf32>
    %c2_i32_52 = arith.constant 2 : i32
    %201 = vector.broadcast %c2_i32_52 : i32 to vector<8x128xi32>
    %202 = arith.cmpi eq, %186, %201 : vector<8x128xi32>
    %cst_53 = arith.constant 0.000000e+00 : f32
    %203 = vector.shape_cast %169 : vector<8x1xf32> to vector<8x1xf32>
    %204 = vector.broadcast %203 : vector<8x1xf32> to vector<8x128xf32>
    %205 = vector.broadcast %cst_53 : f32 to vector<8x128xf32>
    %206 = arith.select %202, %204, %205 : vector<8x128xi1>, vector<8x128xf32>
    %207 = arith.addf %200, %206 : vector<8x128xf32>
    %c0_54 = arith.constant 0 : index
    %c0_55 = arith.constant 0 : index
    %208 = vector.load %arg10[%c0_54, %c0_55] : memref<8x128xf32, #tpu.memory_space<vmem>>, vector<8x128xf32>
    tpu.vector_store %arg10[%c0_54, %c0_55], %207 {strides = array<i32>} : memref<8x128xf32, #tpu.memory_space<vmem>>, vector<8x128xf32>,
    return
  }
  func.func @transform_0(%arg0: i32, %arg1: memref<1xi32, #tpu.memory_space<smem>>) -> (i32, i32) {
    %c0_i32 = arith.constant 0 : i32
    %c0_i32_0 = arith.constant 0 : i32
    return %arg0, %c0_i32 : i32, i32
  }
  func.func @transform_1(%arg0: i32, %arg1: memref<1xi32, #tpu.memory_space<smem>>) -> (i32, i32) {
    %c0_i32 = arith.constant 0 : i32
    %c0_i32_0 = arith.constant 0 : i32
    return %arg0, %c0_i32 : i32, i32
  }
  func.func @transform_2(%arg0: i32, %arg1: memref<1xi32, #tpu.memory_space<smem>>) -> (i32, i32) {
    %c0_i32 = arith.constant 0 : i32
    %c0_i32_0 = arith.constant 0 : i32
    %c0_i32_1 = arith.constant 0 : i32
    return %c0_i32, %c0_i32_0 : i32, i32
  }
  func.func @transform_3(%arg0: i32, %arg1: memref<1xi32, #tpu.memory_space<smem>>) -> (i32, i32) {
    %c0_i32 = arith.constant 0 : i32
    %c0_i32_0 = arith.constant 0 : i32
    %c0_i32_1 = arith.constant 0 : i32
    return %c0_i32, %c0_i32_0 : i32, i32
  }
  func.func @transform_4(%arg0: i32, %arg1: memref<1xi32, #tpu.memory_space<smem>>) -> (i32, i32) {
    %c0_i32 = arith.constant 0 : i32
    %c0_i32_0 = arith.constant 0 : i32
    %c0_i32_1 = arith.constant 0 : i32
    return %c0_i32, %c0_i32_0 : i32, i32
  }
  func.func @transform_5(%arg0: i32, %arg1: memref<1xi32, #tpu.memory_space<smem>>) -> (i32, i32) {
    %c0_i32 = arith.constant 0 : i32
    %c0_i32_0 = arith.constant 0 : i32
    %c0_i32_1 = arith.constant 0 : i32
    return %c0_i32, %c0_i32_0 : i32, i32
  }
  func.func @transform_6(%arg0: i32, %arg1: memref<1xi32, #tpu.memory_space<smem>>) -> (i32, i32) {
    %c0_i32 = arith.constant 0 : i32
    %c0_i32_0 = arith.constant 0 : i32
    %c0_i32_1 = arith.constant 0 : i32
    return %c0_i32, %c0_i32_0 : i32, i32
  }
  func.func @transform_7(%arg0: i32, %arg1: memref<1xi32, #tpu.memory_space<smem>>) -> (i32, i32) {
    %c0_i32 = arith.constant 0 : i32
    %c0_i32_0 = arith.constant 0 : i32
    %c0_i32_1 = arith.constant 0 : i32
    return %c0_i32, %c0_i32_0 : i32, i32
  }
  func.func @transform_8(%arg0: i32, %arg1: memref<1xi32, #tpu.memory_space<smem>>) -> (i32, i32) {
    %c0_i32 = arith.constant 0 : i32
    %c0_i32_0 = arith.constant 0 : i32
    return %arg0, %c0_i32 : i32, i32
  }
}

</mosaic_0001>

<bundles_post_ra>
// kernel: _forward_impl.1
= control target key start
LH: loop header
LB: loop body
LE: loop exit
PB: predicated region body
PF: predicated region fallthrough
CT: control target
= control target key end

     0   :  { %15 = vsyncpa [#allocation5], 0  ;;  %s2227_s0 = inlined_call_operand.<no memory space> [shape: s32[1], index: 0, kind: input, shape index: {}]   ;;  %s2228_s1 = inlined_call_operand.vmem [shape: s32[16,8], index: 1, kind: input, shape index: {}]   ;;  %s2229_s2 = inlined_call_operand.vmem [shape: s32[16,1], index: 2, kind: input, shape index: {}]   ;;  %s2230_s3 = inlined_call_operand.hbm [shape: f32[128,128], index: 3, kind: input, shape index: {}]   ;;  %s2231_s4 = inlined_call_operand.hbm [shape: f32[128,128], index: 4, kind: input, shape index: {}]   ;;  %s2232_s5 = inlined_call_operand.hbm [shape: f32[128,128], index: 5, kind: input, shape index: {}]   ;;  %s2233_s6 = inlined_call_operand.vmem [shape: f32[1,128], index: 6, kind: input, shape index: {}]   ;;  %s2234_s7 = inlined_call_operand.hbm [shape: f32[128,128], index: 7, kind: input, shape index: {}]   ;;  %s2235_s8 = inlined_call_operand.vmem [shape: f32[1,128], index: 8, kind: input, shape index: {}]   ;;  %s2236_s9 = inlined_call_operand.vmem [shape: f32[16,128], index: 9, kind: output, shape index: {}]  }
   0x1   :  { %16 = vsyncpa [#allocation7], 0 }
   0x2   :  { %17 = vsyncpa [#allocation10], 0  ;;  %s1595_s29 = smov 0  }
   0x3 LB: > { %s1601_s30 = sadd.s32 4294967295, %s1527_s29   ;;  %p1241_p0 = scmp.ge.s32.totalorder %s1527_s29, 1  ;;  %s1527_s29 = sphi %s1595_s29, %s23_s29  }
   0x4   : > { %p232_p1 = scmp.lt.s32.totalorder %s1527_s29, 3  ;;  %p1303_p2 = scmp.eq.s32.totalorder %s1601_s30, 0 }
   0x5   : > { %s257_s12 = sshll.u32 %s2231_s4, 4  ;;  %s243_s16 = sshll.u32 %s2230_s3, 4  ;;  %s258_s12 = int_to_ptr.hbm [resolvable:$true] %s257_s12  ;;  %s244_s16 = int_to_ptr.hbm [resolvable:$true] %s243_s16 }
   0x6   : > { %p1609_p3 = pnand %p1241_p0, %p232_p1  ;;  %s1529_s17 = smov [#allocation6]  }
   0x7   : > { %s259_s18 = sshll.u32 %s1529_s17, 4  ;;  %s1530_s20 = smov [#allocation4]   ;;  %s260_s18 = int_to_ptr.vmem [resolvable:$true] %s259_s18 }
   0x8   : > { %p1290_p4 = pneg %p1609_p3  ;;  %s245_s21 = sshll.u32 %s1530_s20, 4  ;;  %s246_s21 = int_to_ptr.vmem [resolvable:$true] %s245_s21 }
   0x9   : > { %s271_s24 = sshll.u32 %s2232_s5, 4  ;;  %s1531_s0 = smov 128   ;;  %s272_s24 = int_to_ptr.hbm [resolvable:$true] %s271_s24 }
   0xa   : > { %p1620_p5 = pnand %p1303_p2, %p1290_p4  ;;  %s1532_s25 = smov 8  }
   0xb   : > { %s1533_s26 = smov [#allocation8]   ;;  %s288_s11 = sshll.u32 %s2234_s7, 4  ;;  %s289_s11 = int_to_ptr.hbm [resolvable:$true] %s288_s11 }
   0xc   : > { %1296 = dma.hbm_to_vmem [thread:$0]  (!%p1620_p5), %s258_s12, 2048, %s260_s18, [#allocation7], %s1531_s0, %s1531_s0, %s1532_s25  }
   0xd   : > { %1293 = dma.hbm_to_vmem [thread:$0]  (!%p1620_p5), %s244_s16, 2048, %s246_s21, [#allocation5], %s1531_s0, %s1531_s0, %s1532_s25  }
   0xe   : > { %s273_s27 = sshll.u32 %s1533_s26, 4  ;;  %s1534_s14 = smov [#allocation9]   ;;  %s274_s27 = int_to_ptr.vmem [resolvable:$true] %s273_s27 }
   0xf   : > { %1299 = dma.hbm_to_vmem [thread:$0]  (!%p1620_p5), %s272_s24, 2048, %s274_s27, [#allocation7], %s1531_s0, %s1531_s0, %s1532_s25  }
  0x10   : > { %s290_s15 = sshll.u32 %s1534_s14, 4  ;;  %323 = sbr.rel (%p1609_p3) target bundleno = 2024 (0x7e8), region = 52  ;;  %s291_s15 = int_to_ptr.vmem [resolvable:$true] %s290_s15 }
  0x11   : > { %1302 = dma.hbm_to_vmem [thread:$0]  (!%p1620_p5), %s289_s11, 2048, %s291_s15, [#allocation10], %s1531_s0, %s1531_s0, %s1532_s25  }
  0x15   : > { %1514 = dma.done.wait (%p1303_p2), [#allocation5], 2048  }
  0x16   : > { %1516 = vsyncadd (%p1303_p2), [#allocation5], 4294965248 }
  0x17   : > { %1518 = dma.done.wait (%p1303_p2), [#allocation7], 4096  }
  0x18   : > { %1520 = vsyncadd (%p1303_p2), [#allocation7], 4294963200 }
  0x19   : > { %1522 = dma.done.wait (%p1303_p2), [#allocation10], 2048  }
  0x1a   : > { %1524 = vsyncadd (%p1303_p2), [#allocation10], 4294965248  ;;  %p375_p6 = scmp.lt.s32.totalorder %s1601_s30, 1  ;;  %v1535_v0 = vmov 0   ;;  %v1668_v2 = vld [vmem:[#allocation4 + $0x78] sm:$0xff]  ;;  %v1670_v3 = vld [vmem:[#allocation4 + $0x70] sm:$0xff]  ;;  %v438_v44 = vlaneseq }
  0x1b   : > { %1335 = vset.pattern.permute.xlu0 %v1535_v0  ;;  %1337 = vset.pattern.permute.xlu1 %v1535_v0  ;;  %v1674_v4 = vld [vmem:[#allocation4 + $0x68] sm:$0xff]  ;;  %v1678_v5 = vld [vmem:[#allocation4 + $0x60] sm:$0xff]  ;;  %v1682_v6 = vld [vmem:[#allocation4 + $0x58] sm:$0xff]  ;;  %v1536_v20 = vmov 1   ;;  %v1537_v49 = vmov 1.0   ;;  %v1538_v58 = vmov 0.0  }
  0x1c   : > { %s2240_s30 = smov (!%p375_p6, %s1601_s30), 1  ;;  %1339 = vset.pattern.permute.xlu2 %v1535_v0  ;;  %446 = vmatpush.msra.mxu0 %v1668_v2  ;;  %v1686_v7 = vld [vmem:[#allocation4 + $0x50] sm:$0xff]  ;;  %v1690_v8 = vld [vmem:[#allocation4 + $0x48] sm:$0xff]  ;;  %v1694_v9 = vld [vmem:[#allocation4 + $0x40] sm:$0xff]  ;;  %v1838_v47 = vand.u32 127, %v438_v44  ;;  %v1539_v59 = vmov 2  }
  0x1d   : > { %s1657_s12 = sshll.u32 %s2240_s30, 3  ;;  %524 = vmatpush.msra.mxu3 %v1668_v2  ;;  %v1698_v10 = vld [vmem:[#allocation4 + $0x38] sm:$0xff]  ;;  %v1702_v11 = vld [vmem:[#allocation4 + $0x30] sm:$0xff]  ;;  %v1706_v12 = vld [vmem:[#allocation4 + $0x28] sm:$0xff]  ;;  %v1540_v44 = vmov 3  }
  0x1e   : > { %s1663_s17 = scalar_lea.vmem %s2228_s1, %s1657_s12  ;;  %447 = vmatpush.msra.mxu0 %v1670_v3  ;;  %v1710_v13 = vld [vmem:[#allocation4 + $0x20] sm:$0xff]  ;;  %v1714_v14 = vld [vmem:[#allocation4 + $0x18] sm:$0xff]  ;;  %v1718_v15 = vld [vmem:[#allocation4 + $0x10] sm:$0xff]  ;;  %s382_s19 = scalar_lea.vmem %s2229_s2, %s1657_s12 }
  0x1f   : > { %v1666_v1 = vld [vmem:[%s1663_s17] sm:$0xff]  ;;  %525 = vmatpush.msra.mxu3 %v1670_v3  ;;  %v1722_v16 = vld [vmem:[#allocation4 + $0x8] sm:$0xff]  ;;  %v1733_v18 = vld [vmem:[#allocation6 + $0x78] sm:$0xff]  ;;  %s386_s25 = scalar_lea.vmem %s2236_s9, %s1657_s12 }
  0x20   : > { %441 = vperm.xlu0 %1335, %v1666_v1   ;;  %448 = vmatpush.msra.mxu0 %v1674_v4  ;;  %v1729_v17 = vld [vmem:[#allocation4] sm:$0xff]  ;;  %v1735_v19 = vld [vmem:[#allocation6 + $0x70] sm:$0xff]  ;;  %v1738_v21 = vld [vmem:[#allocation8 + $0x78] sm:$0xff] }
  0x21   : > { %526 = vmatpush.msra.mxu3 %v1674_v4  ;;  %486 = vmatpush.msra.mxu2 %v1733_v18  ;;  %v1740_v22 = vld [vmem:[#allocation8 + $0x70] sm:$0xff]  ;;  %v1743_v23 = vld [vmem:[#allocation6 + $0x68] sm:$0xff]  ;;  %v1750_v25 = vld [vmem:[#allocation6 + $0x60] sm:$0xff] }
  0x22   : > { %449 = vmatpush.msra.mxu0 %v1678_v5  ;;  %466 = vmatpush.msra.mxu1 %v1738_v21  ;;  %v1747_v24 = vld [vmem:[#allocation8 + $0x68] sm:$0xff]  ;;  %v1755_v26 = vld [vmem:[#allocation8 + $0x60] sm:$0xff]  ;;  %v1758_v27 = vld [vmem:[#allocation6 + $0x58] sm:$0xff] }
  0x23   : > { %527 = vmatpush.msra.mxu3 %v1678_v5  ;;  %487 = vmatpush.msra.mxu2 %v1735_v19  ;;  %v1763_v28 = vld [vmem:[#allocation8 + $0x58] sm:$0xff]  ;;  %v1766_v29 = vld [vmem:[#allocation6 + $0x50] sm:$0xff]  ;;  %v1774_v31 = vld [vmem:[#allocation6 + $0x48] sm:$0xff] }
  0x24   : > { %450 = vmatpush.msra.mxu0 %v1682_v6  ;;  %467 = vmatpush.msra.mxu1 %v1740_v22  ;;  %v1771_v30 = vld [vmem:[#allocation8 + $0x50] sm:$0xff]  ;;  %v1779_v32 = vld [vmem:[#allocation8 + $0x48] sm:$0xff]  ;;  %v1782_v33 = vld [vmem:[#allocation6 + $0x40] sm:$0xff] }
  0x25   : > { %528 = vmatpush.msra.mxu3 %v1682_v6  ;;  %488 = vmatpush.msra.mxu2 %v1743_v23  ;;  %v1787_v34 = vld [vmem:[#allocation8 + $0x40] sm:$0xff]  ;;  %v1790_v35 = vld [vmem:[#allocation6 + $0x38] sm:$0xff]  ;;  %v1798_v37 = vld [vmem:[#allocation6 + $0x30] sm:$0xff] }
  0x26   : > { %451 = vmatpush.msra.mxu0 %v1686_v7  ;;  %468 = vmatpush.msra.mxu1 %v1747_v24  ;;  %v1795_v36 = vld [vmem:[#allocation8 + $0x38] sm:$0xff]  ;;  %v1803_v38 = vld [vmem:[#allocation8 + $0x30] sm:$0xff]  ;;  %v1806_v39 = vld [vmem:[#allocation6 + $0x28] sm:$0xff] }
  0x27   : > { %529 = vmatpush.msra.mxu3 %v1686_v7  ;;  %489 = vmatpush.msra.mxu2 %v1750_v25  ;;  %v1811_v40 = vld [vmem:[#allocation8 + $0x28] sm:$0xff]  ;;  %v1814_v41 = vld [vmem:[#allocation6 + $0x20] sm:$0xff]  ;;  %v1822_v43 = vld [vmem:[#allocation6 + $0x18] sm:$0xff] }
  0x28   : > { %452 = vmatpush.msra.mxu0 %v1690_v8  ;;  %1336 = vset.pattern.permute.xlu0 %v1536_v20  ;;  %v1819_v42 = vld [vmem:[#allocation8 + $0x20] sm:$0xff]  ;;  %v1828_v45 = vld [vmem:[#allocation6 + $0x10] sm:$0xff]  ;;  %v1834_v46 = vld [vmem:[#allocation6 + $0x8] sm:$0xff] }
  0x29   : > { %530 = vmatpush.msra.mxu3 %v1690_v8  ;;  %519 = vperm.xlu0 %1336, %v1666_v1   ;;  %v1844_v50 = vld [vmem:[#allocation8 + $0x18] sm:$0xff]  ;;  %v1846_v51 = vld [vmem:[#allocation6] sm:$0xff]  ;;  %v1854_v52 = vld [vmem:[#allocation8 + $0x10] sm:$0xff] }
  0x2a   : > { %453 = vmatpush.msra.mxu0 %v1694_v9  ;;  %469 = vmatpush.msra.mxu1 %v1755_v26  ;;  %v1856_v53 = vld [vmem:[#allocation8 + $0x8] sm:$0xff]  ;;  %v1862_v55 = vld [vmem:[%s382_s19] sm:$0xff] }
  0x2b   : > { %531 = vmatpush.msra.mxu3 %v1694_v9  ;;  %490 = vmatpush.msra.mxu2 %v1758_v27  ;;  %v1865_v56 = vld [vmem:[#allocation8] sm:$0xff]  ;;  %vm511_vm2 = vcmp.gt.s32.totalorder %v1862_v55, 0  ;;  %vm586_vm3 = vcmp.gt.s32.totalorder %v1862_v55, 1  ;;  %vm661_vm6 = vcmp.gt.s32.totalorder %v1862_v55, 2  ;;  %vm736_vm9 = vcmp.gt.s32.totalorder %v1862_v55, 3 }
  0x2c   : > { %454 = vmatpush.msra.mxu0 %v1698_v10  ;;  %470 = vmatpush.msra.mxu1 %v1763_v28  ;;  %v512_v57 = vsel %vm511_vm2, 1, %v1535_v0  ;;  %v587_v20 = vsel %vm586_vm3, 1, %v1535_v0  ;;  %vm811_vm12 = vcmp.gt.s32.totalorder %v1862_v55, 4  ;;  %vm886_vm14 = vcmp.gt.s32.totalorder %v1862_v55, 5 }
  0x2d   : > { %532 = vmatpush.msra.mxu3 %v1698_v10  ;;  %491 = vmatpush.msra.mxu2 %v1766_v29  ;;  %vm1036_vm15 = vcmp.gt.s32.totalorder %v1862_v55, 7  ;;  %vm961_vm3 = vcmp.gt.s32.totalorder %v1862_v55, 6 }
  0x2e   : > { %455 = vmatpush.msra.mxu0 %v1702_v11  ;;  %471 = vmatpush.msra.mxu1 %v1771_v30 }
  0x2f   : > { %533 = vmatpush.msra.mxu3 %v1702_v11  ;;  %492 = vmatpush.msra.mxu2 %v1774_v31 }
  0x30   : > { %456 = vmatpush.msra.mxu0 %v1706_v12  ;;  %472 = vmatpush.msra.mxu1 %v1779_v32 }
  0x31   : > { %534 = vmatpush.msra.mxu3 %v1706_v12  ;;  %493 = vmatpush.msra.mxu2 %v1782_v33 }
  0x32   : > { %457 = vmatpush.msra.mxu0 %v1710_v13  ;;  %473 = vmatpush.msra.mxu1 %v1787_v34 }
  0x33   : > { %535 = vmatpush.msra.mxu3 %v1710_v13  ;;  %494 = vmatpush.msra.mxu2 %v1790_v35 }
  0x34   : > { %458 = vmatpush.msra.mxu0 %v1714_v14  ;;  %474 = vmatpush.msra.mxu1 %v1795_v36 }
  0x35   : > { %536 = vmatpush.msra.mxu3 %v1714_v14  ;;  %495 = vmatpush.msra.mxu2 %v1798_v37 }
  0x36   : > { %459 = vmatpush.msra.mxu0 %v1718_v15  ;;  %475 = vmatpush.msra.mxu1 %v1803_v38 }
  0x37   : > { %537 = vmatpush.msra.mxu3 %v1718_v15  ;;  %496 = vmatpush.msra.mxu2 %v1806_v39 }
  0x38   : > { %460 = vmatpush.msra.mxu0 %v1722_v16  ;;  %476 = vmatpush.msra.mxu1 %v1811_v40 }
  0x39   : > { %538 = vmatpush.msra.mxu3 %v1722_v16  ;;  %497 = vmatpush.msra.mxu2 %v1814_v41 }
  0x3a   : > { %461 = vmatpush.msra.mxu0 %v1729_v17  ;;  %477 = vmatpush.msra.mxu1 %v1819_v42 }
  0x3b   : > { %539 = vmatpush.msra.mxu3 %v1729_v17  ;;  %498 = vmatpush.msra.mxu2 %v1822_v43 }
  0x3c   : > { %544 = vmatpush.msrb.mxu0 %v1738_v21  ;;  %1343 = vset.pattern.permute.xlu0 %v1535_v0 }
  0x3d   : > { %619 = vmatpush.msrb.mxu3 %v1738_v21  ;;  %499 = vmatpush.msra.mxu2 %v1828_v45 }
  0x3e   : > { %545 = vmatpush.msrb.mxu0 %v1740_v22  ;;  %478 = vmatpush.msra.mxu1 %v1844_v50 }
  0x3f   : > { %620 = vmatpush.msrb.mxu3 %v1740_v22  ;;  %500 = vmatpush.msra.mxu2 %v1834_v46 }
  0x40   : > { %546 = vmatpush.msrb.mxu0 %v1747_v24  ;;  %479 = vmatpush.msra.mxu1 %v1854_v52 }
  0x41   : > { %621 = vmatpush.msrb.mxu3 %v1747_v24  ;;  %501 = vmatpush.msra.mxu2 %v1846_v51 }
  0x42   : > { %547 = vmatpush.msrb.mxu0 %v1755_v26  ;;  %480 = vmatpush.msra.mxu1 %v1856_v53 }
  0x43   : > { %622 = vmatpush.msrb.mxu3 %v1755_v26  ;;  %599 = vmatpush.msrb.mxu2 %v1668_v2 }
  0x44   : > { %548 = vmatpush.msrb.mxu0 %v1763_v28  ;;  %514 = vperm.xlu1 %1337, %v512_v57  }
  0x45   : > { %623 = vmatpush.msrb.mxu3 %v1763_v28  ;;  %600 = vmatpush.msrb.mxu2 %v1670_v3 }
  0x46   : > { %549 = vmatpush.msrb.mxu0 %v1771_v30  ;;  %481 = vmatpush.msra.mxu1 %v1865_v56 }
  0x47   : > { %624 = vmatpush.msrb.mxu3 %v1771_v30  ;;  %601 = vmatpush.msrb.mxu2 %v1674_v4 }
  0x48   : > { %550 = vmatpush.msrb.mxu0 %v1779_v32  ;;  %482 = vmatmul.f32.vlgmr.msra.gmra.mxu1 %v1538_v58 }
  0x49   : > { %625 = vmatpush.msrb.mxu3 %v1779_v32  ;;  %602 = vmatpush.msrb.mxu2 %v1678_v5 }
  0x4a   : > { %551 = vmatpush.msrb.mxu0 %v1787_v34  ;;  %564 = vmatpush.msrb.mxu1 %v1733_v18 }
  0x4b   : > { %626 = vmatpush.msrb.mxu3 %v1787_v34  ;;  %603 = vmatpush.msrb.mxu2 %v1682_v6 }
  0x4c   : > { %552 = vmatpush.msrb.mxu0 %v1795_v36  ;;  %565 = vmatpush.msrb.mxu1 %v1735_v19 }
  0x4d   : > { %627 = vmatpush.msrb.mxu3 %v1795_v36  ;;  %604 = vmatpush.msrb.mxu2 %v1686_v7 }
  0x4e   : > { %553 = vmatpush.msrb.mxu0 %v1803_v38  ;;  %566 = vmatpush.msrb.mxu1 %v1743_v23 }
  0x4f   : > { %628 = vmatpush.msrb.mxu3 %v1803_v38  ;;  %1338 = vset.pattern.permute.xlu1 %v1539_v59 }
  0x50   : > { %554 = vmatpush.msrb.mxu0 %v1811_v40  ;;  %605 = vmatpush.msrb.mxu2 %v1690_v8 }
  0x51   : > { %629 = vmatpush.msrb.mxu3 %v1811_v40  ;;  %594 = vperm.xlu1 %1338, %v1666_v1  }
  0x52   : > { %555 = vmatpush.msrb.mxu0 %v1819_v42  ;;  %567 = vmatpush.msrb.mxu1 %v1750_v25 }
  0x53   : > { %630 = vmatpush.msrb.mxu3 %v1819_v42  ;;  %606 = vmatpush.msrb.mxu2 %v1694_v9 }
  0x54   : > { %556 = vmatpush.msrb.mxu0 %v1844_v50  ;;  %568 = vmatpush.msrb.mxu1 %v1758_v27 }
  0x55   : > { %631 = vmatpush.msrb.mxu3 %v1844_v50  ;;  %607 = vmatpush.msrb.mxu2 %v1698_v10 }
  0x56   : > { %557 = vmatpush.msrb.mxu0 %v1854_v52  ;;  %569 = vmatpush.msrb.mxu1 %v1766_v29 }
  0x57   : > { %632 = vmatpush.msrb.mxu3 %v1854_v52  ;;  %608 = vmatpush.msrb.mxu2 %v1702_v11 }
  0x58   : > { %558 = vmatpush.msrb.mxu0 %v1856_v53  ;;  %570 = vmatpush.msrb.mxu1 %v1774_v31 }
  0x59   : > { %633 = vmatpush.msrb.mxu3 %v1856_v53  ;;  %609 = vmatpush.msrb.mxu2 %v1706_v12 }
  0x5a   : > { %559 = vmatpush.msrb.mxu0 %v1865_v56  ;;  %571 = vmatpush.msrb.mxu1 %v1782_v33 }
  0x5b   : > { %634 = vmatpush.msrb.mxu3 %v1865_v56  ;;  %1341 = vset.pattern.permute.xlu1 %v1535_v0 }
  0x5c   : > { %610 = vmatpush.msrb.mxu2 %v1710_v13  ;;  %572 = vmatpush.msrb.mxu1 %v1790_v35 }
  0x5d   : > { %589 = vperm.xlu2 %1339, %v587_v20  }
  0x5e   : > { %611 = vmatpush.msrb.mxu2 %v1714_v14  ;;  %573 = vmatpush.msrb.mxu1 %v1798_v37 }
  0x60   : > { %612 = vmatpush.msrb.mxu2 %v1718_v15  ;;  %574 = vmatpush.msrb.mxu1 %v1806_v39 }
  0x62   : > { %613 = vmatpush.msrb.mxu2 %v1722_v16  ;;  %575 = vmatpush.msrb.mxu1 %v1814_v41 }
  0x64   : > { %614 = vmatpush.msrb.mxu2 %v1729_v17  ;;  %576 = vmatpush.msrb.mxu1 %v1822_v43 }
  0x65   : > { %1340 = vset.pattern.permute.xlu2 %v1540_v44  ;;  %v662_v44 = vsel %vm661_vm6, 1, %v1535_v0 }
  0x66   : > { %577 = vmatpush.msrb.mxu1 %v1828_v45  ;;  %669 = vperm.xlu2 %1340, %v1666_v1  }
  0x67   : > { %664 = vperm.xlu1 %1341, %v662_v44   ;;  %v737_v44 = vsel %vm736_vm9, 1, %v1535_v0 }
  0x68   : > { %578 = vmatpush.msrb.mxu1 %v1834_v46  ;;  %739 = vperm.xlu0 %1343, %v737_v44   ;;  %v1054_v44 = vld [vmem:[#allocation9 + $0x58] sm:$0xff] }
  0x6a   : > { %579 = vmatpush.msrb.mxu1 %v1846_v51 }
  0x6c   : > { %674 = vmatpush.msra.mxu1 %v1668_v2 }
  0x6e   : > { %675 = vmatpush.msra.mxu1 %v1670_v3 }
  0x70   : > { %676 = vmatpush.msra.mxu1 %v1674_v4 }
  0x72   : > { %677 = vmatpush.msra.mxu1 %v1678_v5 }
  0x74   : > { %678 = vmatpush.msra.mxu1 %v1682_v6 }
  0x76   : > { %679 = vmatpush.msra.mxu1 %v1686_v7 }
  0x78   : > { %680 = vmatpush.msra.mxu1 %v1690_v8 }
  0x7a   : > { %681 = vmatpush.msra.mxu1 %v1694_v9 }
  0x7c   : > { %682 = vmatpush.msra.mxu1 %v1698_v10 }
  0x7e   : > { %683 = vmatpush.msra.mxu1 %v1702_v11 }
  0x80   : > { %684 = vmatpush.msra.mxu1 %v1706_v12 }
  0x82   : > { %685 = vmatpush.msra.mxu1 %v1710_v13 }
  0x84   : > { %686 = vmatpush.msra.mxu1 %v1714_v14 }
  0x86   : > { %687 = vmatpush.msra.mxu1 %v1718_v15 }
  0x88   : > { %688 = vmatpush.msra.mxu1 %v1722_v16 }
  0x8a   : > { %689 = vmatpush.msra.mxu1 %v1729_v17 }
  0x92   : > { %v442_v48 = vpop.permute.xlu0 %441 }
  0x93   : > { %vm443_vm0 = vcmp.eq.s32.totalorder %v1838_v47, %v442_v48 }
  0x94   : > { %1256 = vmatmul.msk.f32.vlgmr.msra.gmra.mxu0 %vm443_vm0, %v1537_v49 }
  0x95   : > { %639 = vmatpush.msra.mxu0 %v1733_v18 }
  0x97   : > { %640 = vmatpush.msra.mxu0 %v1735_v19 }
  0x99   : > { %641 = vmatpush.msra.mxu0 %v1743_v23 }
  0x9b   : > { %v520_v54 = vpop.permute.xlu0 %519  ;;  %642 = vmatpush.msra.mxu0 %v1750_v25 }
  0x9c   : > { %vm521_vm1 = vcmp.eq.s32.totalorder %v1838_v47, %v520_v54  ;;  %v2000_v54 = vld [vmem:[%s2233_s6] ss:$0 sm:$0xff] }
  0x9d   : > { %1258 = vmatmul.msk.f32.vlgmr.msra.gmra.mxu3 %vm521_vm1, %v1537_v49  ;;  %643 = vmatpush.msra.mxu0 %v1758_v27 }
  0x9e   : > { %714 = vmatpush.msra.mxu3 %v1733_v18 }
  0x9f   : > { %644 = vmatpush.msra.mxu0 %v1766_v29 }
  0xa0   : > { %715 = vmatpush.msra.mxu3 %v1735_v19 }
  0xa1   : > { %645 = vmatpush.msra.mxu0 %v1774_v31 }
  0xa2   : > { %716 = vmatpush.msra.mxu3 %v1743_v23 }
  0xa3   : > { %646 = vmatpush.msra.mxu0 %v1782_v33 }
  0xa4   : > { %717 = vmatpush.msra.mxu3 %v1750_v25 }
  0xa5   : > { %647 = vmatpush.msra.mxu0 %v1790_v35 }
  0xa6   : > { %718 = vmatpush.msra.mxu3 %v1758_v27 }
  0xa7   : > { %648 = vmatpush.msra.mxu0 %v1798_v37 }
  0xa8   : > { %719 = vmatpush.msra.mxu3 %v1766_v29 }
  0xa9   : > { %649 = vmatpush.msra.mxu0 %v1806_v39 }
  0xaa   : > { %720 = vmatpush.msra.mxu3 %v1774_v31 }
  0xab   : > { %650 = vmatpush.msra.mxu0 %v1814_v41 }
  0xac   : > { %721 = vmatpush.msra.mxu3 %v1782_v33 }
  0xad   : > { %651 = vmatpush.msra.mxu0 %v1822_v43 }
  0xae   : > { %722 = vmatpush.msra.mxu3 %v1790_v35 }
  0xaf   : > { %652 = vmatpush.msra.mxu0 %v1828_v45 }
  0xb0   : > { %723 = vmatpush.msra.mxu3 %v1798_v37 }
  0xb1   : > { %653 = vmatpush.msra.mxu0 %v1834_v46 }
  0xb2   : > { %724 = vmatpush.msra.mxu3 %v1806_v39 }
  0xb3   : > { %654 = vmatpush.msra.mxu0 %v1846_v51 }
  0xb4   : > { %725 = vmatpush.msra.mxu3 %v1814_v41 }
  0xb6   : > { %726 = vmatpush.msra.mxu3 %v1822_v43  ;;  %v515_v61 = vpop.permute.xlu1 %514 }
  0xb7   : > { %vm516_vm5 = vcmp.eq.s32.totalorder %v515_v61, 1  ;;  %v590_v61 = vpop.permute.xlu2 %589 }
  0xb8   : > { %727 = vmatpush.msra.mxu3 %v1828_v45  ;;  %vm591_vm8 = vcmp.eq.s32.totalorder %v590_v61, 1 }
  0xba   : > { %728 = vmatpush.msra.mxu3 %v1834_v46 }
  0xbc   : > { %729 = vmatpush.msra.mxu3 %v1846_v51 }
  0xc0   : > { %v670_v20 = vpop.permute.xlu2 %669 }
  0xc1   : > { %vm671_vm7 = vcmp.eq.s32.totalorder %v1838_v47, %v670_v20 }
  0xc3   : > { %v595_v63 = vpop.permute.xlu1 %594 }
  0xc4   : > { %vm596_vm4 = vcmp.eq.s32.totalorder %v1838_v47, %v595_v63 }
  0xc5   : > { %v483_v48 = vpop.f32.mrf.mxu1 }
 0x111   : > { %v463_v60 = vpop.f32.mrf.mxu0 }
 0x112   : > { %502 = vmatmul.f32.vlgmr.msra.gmra.mxu2 %v463_v60 }
 0x113   : > { %694 = vmatpush.msra.mxu2 %v1738_v21 }
 0x115   : > { %695 = vmatpush.msra.mxu2 %v1740_v22 }
 0x117   : > { %696 = vmatpush.msra.mxu2 %v1747_v24 }
 0x119   : > { %697 = vmatpush.msra.mxu2 %v1755_v26 }
 0x11a   : > { %1261 = vmatmul.msk.f32.vlgmr.msrb.gmra.mxu2 %vm596_vm4, %v1537_v49 }
 0x11b   : > { %698 = vmatpush.msra.mxu2 %v1763_v28 }
 0x11d   : > { %699 = vmatpush.msra.mxu2 %v1771_v30 }
 0x11f   : > { %700 = vmatpush.msra.mxu2 %v1779_v32 }
 0x120   : > { %v541_v62 = vpop.f32.mrf.mxu3 }
 0x121   : > { %701 = vmatpush.msra.mxu2 %v1787_v34  ;;  %580 = vmatmul.f32.vlgmr.msrb.gmra.mxu1 %v541_v62 }
 0x122   : > { %769 = vmatpush.msrb.mxu1 %v1738_v21 }
 0x123   : > { %702 = vmatpush.msra.mxu2 %v1795_v36 }
 0x124   : > { %770 = vmatpush.msrb.mxu1 %v1740_v22 }
 0x125   : > { %703 = vmatpush.msra.mxu2 %v1803_v38 }
 0x126   : > { %771 = vmatpush.msrb.mxu1 %v1747_v24 }
 0x127   : > { %704 = vmatpush.msra.mxu2 %v1811_v40 }
 0x128   : > { %772 = vmatpush.msrb.mxu1 %v1755_v26 }
 0x129   : > { %705 = vmatpush.msra.mxu2 %v1819_v42  ;;  %1263 = vmatmul.msk.f32.vlgmr.msra.gmra.mxu1 %vm671_vm7, %v1537_v49 }
 0x12a   : > { %773 = vmatpush.msrb.mxu1 %v1763_v28 }
 0x12b   : > { %706 = vmatpush.msra.mxu2 %v1844_v50 }
 0x12c   : > { %774 = vmatpush.msrb.mxu1 %v1771_v30 }
 0x12d   : > { %707 = vmatpush.msra.mxu2 %v1854_v52 }
 0x12e   : > { %775 = vmatpush.msrb.mxu1 %v1779_v32 }
 0x12f   : > { %708 = vmatpush.msra.mxu2 %v1856_v53 }
 0x130   : > { %776 = vmatpush.msrb.mxu1 %v1787_v34 }
 0x131   : > { %709 = vmatpush.msra.mxu2 %v1865_v56 }
 0x132   : > { %777 = vmatpush.msrb.mxu1 %v1795_v36 }
 0x133   : > { %789 = vmatpush.msrb.mxu2 %v1733_v18 }
 0x134   : > { %778 = vmatpush.msrb.mxu1 %v1803_v38 }
 0x135   : > { %790 = vmatpush.msrb.mxu2 %v1735_v19 }
 0x136   : > { %779 = vmatpush.msrb.mxu1 %v1811_v40 }
 0x137   : > { %791 = vmatpush.msrb.mxu2 %v1743_v23 }
 0x138   : > { %780 = vmatpush.msrb.mxu1 %v1819_v42 }
 0x139   : > { %792 = vmatpush.msrb.mxu2 %v1750_v25 }
 0x13a   : > { %781 = vmatpush.msrb.mxu1 %v1844_v50 }
 0x13b   : > { %793 = vmatpush.msrb.mxu2 %v1758_v27 }
 0x13c   : > { %782 = vmatpush.msrb.mxu1 %v1854_v52 }
 0x13d   : > { %794 = vmatpush.msrb.mxu2 %v1766_v29 }
 0x13e   : > { %783 = vmatpush.msrb.mxu1 %v1856_v53 }
 0x13f   : > { %795 = vmatpush.msrb.mxu2 %v1774_v31 }
 0x140   : > { %784 = vmatpush.msrb.mxu1 %v1865_v56 }
 0x141   : > { %796 = vmatpush.msrb.mxu2 %v1782_v33 }
 0x142   : > { %864 = vmatpush.msra.mxu1 %v1733_v18 }
 0x143   : > { %797 = vmatpush.msrb.mxu2 %v1790_v35 }
 0x144   : > { %865 = vmatpush.msra.mxu1 %v1735_v19 }
 0x145   : > { %798 = vmatpush.msrb.mxu2 %v1798_v37 }
 0x146   : > { %866 = vmatpush.msra.mxu1 %v1743_v23 }
 0x147   : > { %799 = vmatpush.msrb.mxu2 %v1806_v39 }
 0x148   : > { %867 = vmatpush.msra.mxu1 %v1750_v25 }
 0x149   : > { %800 = vmatpush.msrb.mxu2 %v1814_v41 }
 0x14a   : > { %868 = vmatpush.msra.mxu1 %v1758_v27 }
 0x14b   : > { %801 = vmatpush.msrb.mxu2 %v1822_v43 }
 0x14c   : > { %869 = vmatpush.msra.mxu1 %v1766_v29 }
 0x14d   : > { %802 = vmatpush.msrb.mxu2 %v1828_v45 }
 0x14e   : > { %870 = vmatpush.msra.mxu1 %v1774_v31 }
 0x14f   : > { %803 = vmatpush.msrb.mxu2 %v1834_v46 }
 0x150   : > { %871 = vmatpush.msra.mxu1 %v1782_v33 }
 0x151   : > { %804 = vmatpush.msrb.mxu2 %v1846_v51 }
 0x152   : > { %872 = vmatpush.msra.mxu1 %v1790_v35 }
 0x154   : > { %873 = vmatpush.msra.mxu1 %v1798_v37 }
 0x156   : > { %874 = vmatpush.msra.mxu1 %v1806_v39 }
 0x158   : > { %875 = vmatpush.msra.mxu1 %v1814_v41 }
 0x15a   : > { %876 = vmatpush.msra.mxu1 %v1822_v43 }
 0x15c   : > { %877 = vmatpush.msra.mxu1 %v1828_v45 }
 0x15e   : > { %878 = vmatpush.msra.mxu1 %v1834_v46 }
 0x160   : > { %879 = vmatpush.msra.mxu1 %v1846_v51 }
 0x195   : > { %v503_v57 = vpop.f32.mrf.mxu2 }
 0x196   : > { %v504_v58 = vadd.f32 %v503_v57, %v483_v48  ;;  %v1541_v48 = vmov 4  }
 0x197   : > { %1342 = vset.pattern.permute.xlu2 %v1541_v48  ;;  %v1542_v48 = vmov 5  }
 0x198   : > { %v509_v59 = vadd.f32 %v2000_v54, %v504_v58  ;;  %744 = vperm.xlu2 %1342, %v1666_v1   ;;  %1344 = vset.pattern.permute.xlu1 %v1542_v48  ;;  %v1053_v48 = vld [vmem:[#allocation9 + $0x50] sm:$0xff] }
 0x199   : > { %819 = vperm.xlu1 %1344, %v1666_v1  }
 0x19a   : > { %1352 = vtanh.f32 %v509_v59 }
 0x19d   : > { %v616_v63 = vpop.f32.mrf.mxu2 }
 0x19e   : > { %v581_v57 = vpop.f32.mrf.mxu1 }
 0x1a0   : > { %v1353_v60 = vpop.eup %1352  ;;  %1345 = vset.pattern.permute.xlu2 %v1535_v0 }
 0x1a1   : > { %v2016_v62 = vsel %vm516_vm5, %v1353_v60, 0.0  ;;  %1259 = vmatmul.msk.f32.vlgmr.msrb.gmra.mxu0 %vm516_vm5, %v1353_v60 }
 0x1a2   : > { %749 = vmatpush.msrb.mxu0 %v1668_v2 }
 0x1a4   : > { %750 = vmatpush.msrb.mxu0 %v1670_v3 }
 0x1a6   : > { %751 = vmatpush.msrb.mxu0 %v1674_v4 }
 0x1a8   : > { %752 = vmatpush.msrb.mxu0 %v1678_v5 }
 0x1a9   : > { %655 = vmatmul.f32.vlgmr.msra.gmra.mxu0 %v616_v63 }
 0x1aa   : > { %753 = vmatpush.msrb.mxu0 %v1682_v6 }
 0x1ac   : > { %754 = vmatpush.msrb.mxu0 %v1686_v7 }
 0x1ae   : > { %755 = vmatpush.msrb.mxu0 %v1690_v8 }
 0x1b0   : > { %756 = vmatpush.msrb.mxu0 %v1694_v9 }
 0x1b2   : > { %757 = vmatpush.msrb.mxu0 %v1698_v10 }
 0x1b4   : > { %758 = vmatpush.msrb.mxu0 %v1702_v11 }
 0x1b6   : > { %759 = vmatpush.msrb.mxu0 %v1706_v12 }
 0x1b8   : > { %760 = vmatpush.msrb.mxu0 %v1710_v13 }
 0x1ba   : > { %761 = vmatpush.msrb.mxu0 %v1714_v14 }
 0x1bc   : > { %762 = vmatpush.msrb.mxu0 %v1718_v15 }
 0x1be   : > { %763 = vmatpush.msrb.mxu0 %v1722_v16 }
 0x1c0   : > { %764 = vmatpush.msrb.mxu0 %v1729_v17 }
 0x1c2   : > { %844 = vmatpush.msra.mxu0 %v1738_v21 }
 0x1c4   : > { %845 = vmatpush.msra.mxu0 %v1740_v22 }
 0x1c6   : > { %846 = vmatpush.msra.mxu0 %v1747_v24 }
 0x1c8   : > { %847 = vmatpush.msra.mxu0 %v1755_v26 }
 0x1ca   : > { %848 = vmatpush.msra.mxu0 %v1763_v28 }
 0x1cc   : > { %849 = vmatpush.msra.mxu0 %v1771_v30 }
 0x1ce   : > { %850 = vmatpush.msra.mxu0 %v1779_v32 }
 0x1d0   : > { %851 = vmatpush.msra.mxu0 %v1787_v34 }
 0x1d2   : > { %852 = vmatpush.msra.mxu0 %v1795_v36 }
 0x1d4   : > { %853 = vmatpush.msra.mxu0 %v1803_v38 }
 0x1d6   : > { %854 = vmatpush.msra.mxu0 %v1811_v40 }
 0x1d8   : > { %855 = vmatpush.msra.mxu0 %v1819_v42 }
 0x1da   : > { %856 = vmatpush.msra.mxu0 %v1844_v50 }
 0x1dc   : > { %857 = vmatpush.msra.mxu0 %v1854_v52 }
 0x1de   : > { %858 = vmatpush.msra.mxu0 %v1856_v53 }
 0x1e0   : > { %859 = vmatpush.msra.mxu0 %v1865_v56 }
 0x1f2   : > { %v745_v61 = vpop.permute.xlu2 %744 }
 0x1f3   : > { %vm746_vm10 = vcmp.eq.s32.totalorder %v1838_v47, %v745_v61 }
 0x1f4   : > { %1265 = vmatmul.msk.f32.vlgmr.msrb.gmra.mxu0 %vm746_vm10, %v1537_v49 }
 0x1f5   : > { %939 = vmatpush.msrb.mxu0 %v1733_v18 }
 0x1f7   : > { %940 = vmatpush.msrb.mxu0 %v1735_v19 }
 0x1f9   : > { %941 = vmatpush.msrb.mxu0 %v1743_v23 }
 0x1fb   : > { %942 = vmatpush.msrb.mxu0 %v1750_v25 }
 0x1fd   : > { %943 = vmatpush.msrb.mxu0 %v1758_v27 }
 0x1ff   : > { %944 = vmatpush.msrb.mxu0 %v1766_v29 }
 0x201   : > { %945 = vmatpush.msrb.mxu0 %v1774_v31 }
 0x203   : > { %946 = vmatpush.msrb.mxu0 %v1782_v33 }
 0x205   : > { %947 = vmatpush.msrb.mxu0 %v1790_v35 }
 0x207   : > { %948 = vmatpush.msrb.mxu0 %v1798_v37 }
 0x209   : > { %949 = vmatpush.msrb.mxu0 %v1806_v39 }
 0x20b   : > { %950 = vmatpush.msrb.mxu0 %v1814_v41 }
 0x20d   : > { %951 = vmatpush.msrb.mxu0 %v1822_v43 }
 0x20f   : > { %952 = vmatpush.msrb.mxu0 %v1828_v45 }
 0x211   : > { %953 = vmatpush.msrb.mxu0 %v1834_v46 }
 0x213   : > { %954 = vmatpush.msrb.mxu0 %v1846_v51 }
 0x21e   : > { %v561_v58 = vpop.f32.mrf.mxu0 }
 0x21f   : > { %v582_v59 = vadd.f32 %v581_v57, %v561_v58 }
 0x221   : > { %v584_v60 = vadd.f32 %v2000_v54, %v582_v59 }
 0x223   : > { %1354 = vtanh.f32 %v584_v60 }
 0x226   : > { %v656_v57 = vpop.f32.mrf.mxu0 }
 0x229   : > { %v1355_v63 = vpop.eup %1354 }
 0x22a   : > { %v2072_v20 = vsel %vm591_vm8, %v1355_v63, %v2016_v62  ;;  %v691_v62 = vpop.f32.mrf.mxu1  ;;  %v665_v63 = vpop.permute.xlu1 %664  ;;  %vm1083_vm8 = vcmp.lt.s32.totalorder %v1838_v47, 16 }
 0x22b   : > { %635 = vmatmul.f32.vlgmr.msrb.gmra.mxu3 %v2072_v20  ;;  %vm666_vm11 = vcmp.eq.s32.totalorder %v665_v63, 1 }
 0x22c   : > { %824 = vmatpush.msrb.mxu3 %v1668_v2 }
 0x22e   : > { %825 = vmatpush.msrb.mxu3 %v1670_v3 }
 0x230   : > { %826 = vmatpush.msrb.mxu3 %v1674_v4 }
 0x232   : > { %827 = vmatpush.msrb.mxu3 %v1678_v5 }
 0x233   : > { %730 = vmatmul.f32.vlgmr.msra.gmra.mxu3 %v691_v62 }
 0x234   : > { %828 = vmatpush.msrb.mxu3 %v1682_v6 }
 0x236   : > { %829 = vmatpush.msrb.mxu3 %v1686_v7 }
 0x238   : > { %830 = vmatpush.msrb.mxu3 %v1690_v8 }
 0x23a   : > { %831 = vmatpush.msrb.mxu3 %v1694_v9 }
 0x23c   : > { %832 = vmatpush.msrb.mxu3 %v1698_v10 }
 0x23e   : > { %833 = vmatpush.msrb.mxu3 %v1702_v11 }
 0x240   : > { %834 = vmatpush.msrb.mxu3 %v1706_v12 }
 0x242   : > { %835 = vmatpush.msrb.mxu3 %v1710_v13 }
 0x244   : > { %836 = vmatpush.msrb.mxu3 %v1714_v14 }
 0x246   : > { %837 = vmatpush.msrb.mxu3 %v1718_v15 }
 0x248   : > { %838 = vmatpush.msrb.mxu3 %v1722_v16 }
 0x24a   : > { %839 = vmatpush.msrb.mxu3 %v1729_v17 }
 0x24c   : > { %919 = vmatpush.msra.mxu3 %v1738_v21 }
 0x24e   : > { %920 = vmatpush.msra.mxu3 %v1740_v22 }
 0x250   : > { %921 = vmatpush.msra.mxu3 %v1747_v24 }
 0x252   : > { %922 = vmatpush.msra.mxu3 %v1755_v26 }
 0x254   : > { %923 = vmatpush.msra.mxu3 %v1763_v28 }
 0x256   : > { %924 = vmatpush.msra.mxu3 %v1771_v30 }
 0x258   : > { %925 = vmatpush.msra.mxu3 %v1779_v32 }
 0x25a   : > { %926 = vmatpush.msra.mxu3 %v1787_v34 }
 0x25c   : > { %927 = vmatpush.msra.mxu3 %v1795_v36 }
 0x25e   : > { %928 = vmatpush.msra.mxu3 %v1803_v38 }
 0x260   : > { %929 = vmatpush.msra.mxu3 %v1811_v40 }
 0x262   : > { %930 = vmatpush.msra.mxu3 %v1819_v42 }
 0x264   : > { %931 = vmatpush.msra.mxu3 %v1844_v50 }
 0x266   : > { %932 = vmatpush.msra.mxu3 %v1854_v52 }
 0x268   : > { %933 = vmatpush.msra.mxu3 %v1856_v53 }
 0x26a   : > { %934 = vmatpush.msra.mxu3 %v1865_v56 }
 0x2ae   : > { %v636_v58 = vpop.f32.mrf.mxu3 }
 0x2af   : > { %v657_v59 = vadd.f32 %v656_v57, %v636_v58  ;;  %v1052_v57 = vld [vmem:[#allocation9 + $0x48] sm:$0xff]  ;;  %v1051_v58 = vld [vmem:[#allocation9 + $0x40] sm:$0xff] }
 0x2b1   : > { %v659_v60 = vadd.f32 %v2000_v54, %v657_v59  ;;  %v1050_v59 = vld [vmem:[#allocation9 + $0x38] sm:$0xff] }
 0x2b3   : > { %1356 = vtanh.f32 %v659_v60 }
 0x2b9   : > { %v1357_v62 = vpop.eup %1356 }
 0x2ba   : > { %v2131_v61 = vsel %vm666_vm11, %v1357_v62, %v2072_v20  ;;  %v1057_v20 = vld [vmem:[#allocation9 + $0x70] sm:$0xff] }
 0x2bb   : > { %710 = vmatmul.f32.vlgmr.msra.gmra.mxu2 %v2131_v61 }
 0x2bc   : > { %899 = vmatpush.msra.mxu2 %v1668_v2  ;;  %v766_v2 = vpop.f32.mrf.mxu0 }
 0x2be   : > { %900 = vmatpush.msra.mxu2 %v1670_v3  ;;  %v820_v3 = vpop.permute.xlu1 %819 }
 0x2bf   : > { %vm821_vm13 = vcmp.eq.s32.totalorder %v1838_v47, %v820_v3 }
 0x2c0   : > { %901 = vmatpush.msra.mxu2 %v1674_v4  ;;  %v812_v4 = vsel %vm811_vm12, 1, %v1535_v0  ;;  %1267 = vmatmul.msk.f32.vlgmr.msrb.gmra.mxu3 %vm821_vm13, %v1537_v49  ;;  %vm1123_vm12 = vcmp.eq.s32.totalorder %v1838_v47, 0  ;;  %vm1126_vm13 = vcmp.eq.s32.totalorder %v1838_v47, 1 }
 0x2c1   : > { %814 = vperm.xlu2 %1345, %v812_v4   ;;  %1014 = vmatpush.msrb.mxu3 %v1733_v18  ;;  %v1376_v18 = vld [vmem:[#allocation4 + $0x68] sm:$0xff] }
 0x2c2   : > { %902 = vmatpush.msra.mxu2 %v1678_v5  ;;  %v1543_v5 = vmov 6  }
 0x2c3   : > { %805 = vmatmul.f32.vlgmr.msrb.gmra.mxu2 %v766_v2  ;;  %1346 = vset.pattern.permute.xlu1 %v1543_v5  ;;  %v1049_v5 = vld [vmem:[#allocation9 + $0x30] sm:$0xff] }
 0x2c4   : > { %903 = vmatpush.msra.mxu2 %v1682_v6  ;;  %894 = vperm.xlu1 %1346, %v1666_v1   ;;  %v887_v6 = vsel %vm886_vm14, 1, %v1535_v0  ;;  %v1037_v1 = vsel %vm1036_vm15, 1, %v1535_v0  ;;  %vm1129_vm14 = vcmp.eq.s32.totalorder %v1838_v47, 2 }
 0x2c5   : > { %1015 = vmatpush.msrb.mxu3 %v1735_v19  ;;  %v1377_v19 = vld [vmem:[#allocation4 + $0x60] sm:$0xff] }
 0x2c6   : > { %904 = vmatpush.msra.mxu2 %v1686_v7  ;;  %v731_v7 = vpop.f32.mrf.mxu3 }
 0x2c7   : > { %1016 = vmatpush.msrb.mxu3 %v1743_v23  ;;  %v1380_v23 = vld [vmem:[#allocation4 + $0x48] sm:$0xff] }
 0x2c8   : > { %905 = vmatpush.msra.mxu2 %v1690_v8 }
 0x2c9   : > { %1017 = vmatpush.msrb.mxu3 %v1750_v25  ;;  %889 = vperm.xlu2 %1345, %v887_v6   ;;  %v1382_v25 = vld [vmem:[#allocation4 + $0x38] sm:$0xff]  ;;  %v1048_v6 = vld [vmem:[#allocation9 + $0x28] sm:$0xff] }
 0x2ca   : > { %906 = vmatpush.msra.mxu2 %v1694_v9 }
 0x2cb   : > { %1018 = vmatpush.msrb.mxu3 %v1758_v27  ;;  %v1384_v27 = vld [vmem:[#allocation4 + $0x28] sm:$0xff] }
 0x2cc   : > { %907 = vmatpush.msra.mxu2 %v1698_v10  ;;  %1348 = vset.pattern.permute.xlu1 %v1535_v0 }
 0x2cd   : > { %1019 = vmatpush.msrb.mxu3 %v1766_v29  ;;  %v1386_v29 = vld [vmem:[#allocation4 + $0x18] sm:$0xff] }
 0x2ce   : > { %908 = vmatpush.msra.mxu2 %v1702_v11  ;;  %v740_v11 = vpop.permute.xlu0 %739 }
 0x2cf   : > { %1020 = vmatpush.msrb.mxu3 %v1774_v31  ;;  %vm741_vm0 = vcmp.eq.s32.totalorder %v740_v11, 1 }
 0x2d0   : > { %909 = vmatpush.msra.mxu2 %v1706_v12 }
 0x2d1   : > { %1021 = vmatpush.msrb.mxu3 %v1782_v33  ;;  %1039 = vperm.xlu2 %1345, %v1037_v1   ;;  %v1544_v33 = vmov 7   ;;  %v1047_v1 = vld [vmem:[#allocation9 + $0x20] sm:$0xff] }
 0x2d2   : > { %910 = vmatpush.msra.mxu2 %v1710_v13  ;;  %1347 = vset.pattern.permute.xlu0 %v1544_v33 }
 0x2d3   : > { %1022 = vmatpush.msrb.mxu3 %v1790_v35 }
 0x2d4   : > { %911 = vmatpush.msra.mxu2 %v1714_v14  ;;  %v1374_v14 = vld [vmem:[#allocation4 + $0x78] sm:$0xff] }
 0x2d5   : > { %1023 = vmatpush.msrb.mxu3 %v1798_v37 }
 0x2d6   : > { %912 = vmatpush.msra.mxu2 %v1718_v15  ;;  %v1375_v15 = vld [vmem:[#allocation4 + $0x70] sm:$0xff] }
 0x2d7   : > { %1024 = vmatpush.msrb.mxu3 %v1806_v39 }
 0x2d8   : > { %913 = vmatpush.msra.mxu2 %v1722_v16 }
 0x2d9   : > { %1025 = vmatpush.msrb.mxu3 %v1814_v41 }
 0x2da   : > { %914 = vmatpush.msra.mxu2 %v1729_v17 }
 0x2db   : > { %1026 = vmatpush.msrb.mxu3 %v1822_v43 }
 0x2dc   : > { %994 = vmatpush.msrb.mxu2 %v1738_v21  ;;  %v1378_v21 = vld [vmem:[#allocation4 + $0x58] sm:$0xff] }
 0x2dd   : > { %1027 = vmatpush.msrb.mxu3 %v1828_v45 }
 0x2de   : > { %995 = vmatpush.msrb.mxu2 %v1740_v22  ;;  %v1379_v22 = vld [vmem:[#allocation4 + $0x50] sm:$0xff] }
 0x2df   : > { %1028 = vmatpush.msrb.mxu3 %v1834_v46 }
 0x2e0   : > { %996 = vmatpush.msrb.mxu2 %v1747_v24  ;;  %v1381_v24 = vld [vmem:[#allocation4 + $0x40] sm:$0xff] }
 0x2e1   : > { %1029 = vmatpush.msrb.mxu3 %v1846_v51 }
 0x2e2   : > { %997 = vmatpush.msrb.mxu2 %v1755_v26  ;;  %v1383_v26 = vld [vmem:[#allocation4 + $0x30] sm:$0xff] }
 0x2e4   : > { %998 = vmatpush.msrb.mxu2 %v1763_v28  ;;  %v1385_v28 = vld [vmem:[#allocation4 + $0x20] sm:$0xff] }
 0x2e6   : > { %999 = vmatpush.msrb.mxu2 %v1771_v30  ;;  %v1387_v30 = vld [vmem:[#allocation4 + $0x10] sm:$0xff] }
 0x2e8   : > { %1000 = vmatpush.msrb.mxu2 %v1779_v32 }
 0x2ea   : > { %1001 = vmatpush.msrb.mxu2 %v1787_v34  ;;  %v1388_v34 = vld [vmem:[%s1663_s17] sm:$0xff] }
 0x2eb   : > { %969 = vperm.xlu0 %1347, %v1388_v34  }
 0x2ec   : > { %1002 = vmatpush.msrb.mxu2 %v1795_v36 }
 0x2ee   : > { %1003 = vmatpush.msrb.mxu2 %v1803_v38 }
 0x2f0   : > { %1004 = vmatpush.msrb.mxu2 %v1811_v40 }
 0x2f2   : > { %1005 = vmatpush.msrb.mxu2 %v1819_v42  ;;  %v962_v42 = vsel %vm961_vm3, 1, %v1535_v0 }
 0x2f3   : > { %1349 = vset.pattern.permute.xlu0 %v1535_v0  ;;  %964 = vperm.xlu1 %1348, %v962_v42   ;;  %v1056_v0 = vld [vmem:[#allocation9 + $0x68] sm:$0xff] }
 0x2f4   : > { %1006 = vmatpush.msrb.mxu2 %v1844_v50 }
 0x2f6   : > { %1007 = vmatpush.msrb.mxu2 %v1854_v52 }
 0x2f8   : > { %1008 = vmatpush.msrb.mxu2 %v1856_v53 }
 0x2fa   : > { %1009 = vmatpush.msrb.mxu2 %v1865_v56  ;;  %v1058_v56 = vld [vmem:[#allocation9 + $0x78] sm:$0xff] }
 0x336   : > { %v895_v32 = vpop.permute.xlu1 %894 }
 0x337   : > { %vm896_vm1 = vcmp.eq.s32.totalorder %v1838_v47, %v895_v32 }
 0x338   : > { %1269 = vmatmul.msk.f32.vlgmr.msra.gmra.mxu2 %vm896_vm1, %v1537_v49 }
 0x33e   : > { %v711_v8 = vpop.f32.mrf.mxu2 }
 0x33f   : > { %v732_v9 = vadd.f32 %v731_v7, %v711_v8  ;;  %v1046_v7 = vld [vmem:[#allocation9 + $0x18] sm:$0xff]  ;;  %v1045_v8 = vld [vmem:[#allocation9 + $0x10] sm:$0xff] }
 0x341   : > { %v734_v10 = vadd.f32 %v2000_v54, %v732_v9  ;;  %v1044_v9 = vld [vmem:[#allocation9 + $0x8] sm:$0xff] }
 0x343   : > { %1358 = vtanh.f32 %v734_v10  ;;  %v841_v31 = vpop.f32.mrf.mxu3  ;;  %v1043_v10 = vld [vmem:[#allocation9] sm:$0xff] }
 0x346   : > { %v806_v35 = vpop.f32.mrf.mxu2 }
 0x349   : > { %v1359_v12 = vpop.eup %1358 }
 0x34a   : > { %v742_v13 = vsel %vm741_vm0, %v1359_v12, %v2131_v61 }
 0x34b   : > { %785 = vmatmul.f32.vlgmr.msrb.gmra.mxu1 %v742_v13 }
 0x34c   : > { %974 = vmatpush.msrb.mxu1 %v1374_v14 }
 0x34e   : > { %975 = vmatpush.msrb.mxu1 %v1375_v15 }
 0x350   : > { %976 = vmatpush.msrb.mxu1 %v1376_v18 }
 0x352   : > { %977 = vmatpush.msrb.mxu1 %v1377_v19 }
 0x353   : > { %880 = vmatmul.f32.vlgmr.msra.gmra.mxu1 %v841_v31 }
 0x354   : > { %978 = vmatpush.msrb.mxu1 %v1378_v21  ;;  %v1351_v21 = vld [vmem:[%s2235_s8] ss:$0 sm:$0xff] }
 0x356   : > { %979 = vmatpush.msrb.mxu1 %v1379_v22 }
 0x358   : > { %980 = vmatpush.msrb.mxu1 %v1380_v23 }
 0x35a   : > { %981 = vmatpush.msrb.mxu1 %v1381_v24 }
 0x35c   : > { %982 = vmatpush.msrb.mxu1 %v1382_v25 }
 0x35d   : > { %v970_v41 = vpop.permute.xlu0 %969 }
 0x35e   : > { %983 = vmatpush.msrb.mxu1 %v1383_v26  ;;  %vm971_vm4 = vcmp.eq.s32.totalorder %v1838_v47, %v970_v41 }
 0x360   : > { %984 = vmatpush.msrb.mxu1 %v1384_v27 }
 0x362   : > { %985 = vmatpush.msrb.mxu1 %v1385_v28 }
 0x364   : > { %986 = vmatpush.msrb.mxu1 %v1386_v29 }
 0x365   : > { %v965_v2 = vpop.permute.xlu1 %964 }
 0x366   : > { %987 = vmatpush.msrb.mxu1 %v1387_v30  ;;  %vm966_vm6 = vcmp.eq.s32.totalorder %v965_v2, 1 }
 0x368   : > { %988 = vmatpush.msrb.mxu1 %v1722_v16 }
 0x36a   : > { %989 = vmatpush.msrb.mxu1 %v1729_v17  ;;  %v815_v17 = vpop.permute.xlu2 %814 }
 0x36b   : > { %vm816_vm2 = vcmp.eq.s32.totalorder %v815_v17, 1  ;;  %1271 = vmatmul.msk.f32.vlgmr.msrb.gmra.mxu1 %vm971_vm4, %v1537_v49  ;;  %v1055_v49 = vld [vmem:[#allocation9 + $0x60] sm:$0xff] }
 0x372   : > { %v890_v51 = vpop.permute.xlu2 %889 }
 0x373   : > { %vm891_vm5 = vcmp.eq.s32.totalorder %v890_v51, 1 }
 0x37a   : > { %v1040_v15 = vpop.permute.xlu2 %1039 }
 0x37b   : > { %vm1041_vm7 = vcmp.eq.s32.totalorder %v1040_v15, 1 }
 0x3bb   : > { %v916_v40 = vpop.f32.mrf.mxu2 }
 0x3c8   : > { %v786_v36 = vpop.f32.mrf.mxu1 }
 0x3c9   : > { %v807_v37 = vadd.f32 %v806_v35, %v786_v36 }
 0x3cb   : > { %v809_v16 = vadd.f32 %v2000_v54, %v807_v37 }
 0x3cd   : > { %1360 = vtanh.f32 %v809_v16 }
 0x3d0   : > { %v881_v43 = vpop.f32.mrf.mxu1 }
 0x3d3   : > { %v1361_v38 = vpop.eup %1360 }
 0x3d4   : > { %v817_v39 = vsel %vm816_vm2, %v1361_v38, %v742_v13 }
 0x3d5   : > { %860 = vmatmul.f32.vlgmr.msra.gmra.mxu0 %v817_v39 }
 0x3d6   : > { %1063 = vmatpush.msra.mxu0 %v1058_v56 }
 0x3d8   : > { %1064 = vmatpush.msra.mxu0 %v1057_v20 }
 0x3da   : > { %1065 = vmatpush.msra.mxu0 %v1056_v0 }
 0x3dc   : > { %1066 = vmatpush.msra.mxu0 %v1055_v49 }
 0x3dd   : > { %955 = vmatmul.f32.vlgmr.msrb.gmra.mxu0 %v916_v40 }
 0x3de   : > { %1067 = vmatpush.msra.mxu0 %v1054_v44 }
 0x3e0   : > { %1068 = vmatpush.msra.mxu0 %v1053_v48 }
 0x3e2   : > { %1069 = vmatpush.msra.mxu0 %v1052_v57 }
 0x3e4   : > { %1070 = vmatpush.msra.mxu0 %v1051_v58 }
 0x3e6   : > { %1071 = vmatpush.msra.mxu0 %v1050_v59 }
 0x3e8   : > { %v991_v55 = vpop.f32.mrf.mxu1  ;;  %1072 = vmatpush.msra.mxu0 %v1049_v5 }
 0x3ea   : > { %1073 = vmatpush.msra.mxu0 %v1048_v6 }
 0x3ec   : > { %1074 = vmatpush.msra.mxu0 %v1047_v1 }
 0x3ee   : > { %1075 = vmatpush.msra.mxu0 %v1046_v7 }
 0x3f0   : > { %1076 = vmatpush.msra.mxu0 %v1045_v8 }
 0x3f2   : > { %1077 = vmatpush.msra.mxu0 %v1044_v9 }
 0x3f4   : > { %1078 = vmatpush.msra.mxu0 %v1043_v10 }
 0x452   : > { %v861_v45 = vpop.f32.mrf.mxu0 }
 0x453   : > { %v882_v46 = vadd.f32 %v881_v43, %v861_v45 }
 0x455   : > { %v884_v50 = vadd.f32 %v2000_v54, %v882_v46 }
 0x457   : > { %1362 = vtanh.f32 %v884_v50 }
 0x45a   : > { %v956_v60 = vpop.f32.mrf.mxu0 }
 0x45d   : > { %v1363_v52 = vpop.eup %1362 }
 0x45e   : > { %v892_v53 = vsel %vm891_vm5, %v1363_v52, %v817_v39 }
 0x45f   : > { %935 = vmatmul.f32.vlgmr.msra.gmra.mxu3 %v892_v53 }
 0x467   : > { %1030 = vmatmul.f32.vlgmr.msrb.gmra.mxu3 %v991_v55 }
 0x4e2   : > { %v936_v63 = vpop.f32.mrf.mxu3 }
 0x4e3   : > { %v957_v62 = vadd.f32 %v956_v60, %v936_v63 }
 0x4e5   : > { %v959_v61 = vadd.f32 %v2000_v54, %v957_v62 }
 0x4e7   : > { %1364 = vtanh.f32 %v959_v61 }
 0x4ea   : > { %v1031_v11 = vpop.f32.mrf.mxu3 }
 0x4ed   : > { %v1365_v3 = vpop.eup %1364 }
 0x4ee   : > { %v967_v4 = vsel %vm966_vm6, %v1365_v3, %v892_v53 }
 0x4ef   : > { %1010 = vmatmul.f32.vlgmr.msrb.gmra.mxu2 %v967_v4 }
 0x572   : > { %v1011_v12 = vpop.f32.mrf.mxu2 }
 0x573   : > { %v1032_v13 = vadd.f32 %v1031_v11, %v1011_v12 }
 0x575   : > { %v1034_v14 = vadd.f32 %v2000_v54, %v1032_v13 }
 0x577   : > { %1366 = vtanh.f32 %v1034_v14 }
 0x57d   : > { %v1367_v18 = vpop.eup %1366 }
 0x57e   : > { %v1042_v19 = vsel %vm1041_vm7, %v1367_v18, %v967_v4 }
 0x57f   : > { %1079 = vmatmul.f32.vlgmr.msra.gmra.mxu0 %v1042_v19 }
 0x5fc   : > { %v1080_v22 = vpop.f32.mrf.mxu0 }
 0x5fd   : > { %v1081_v23 = vadd.f32 %v1351_v21, %v1080_v22 }
 0x5ff   : > { %v1084_v24 = vsel %vm1083_vm8, %v1081_v23, -1e+30 }
 0x600   : > { %1085 = vmax.xlane.f32.xlu1 %v1084_v24 }
 0x673   : > { %v1086_v25 = vpop.xlane.xlu1 %1085 }
 0x674   : > { %v1087_v26 = vsub.f32 %v1084_v24, %v1086_v25  ;;  %vm1101_vm9 = vcmp.ge.f32.partialorder %v1084_v24, %v1086_v25 }
 0x675   : > { %v1102_v54 = vsel %vm1101_vm9, %v1838_v47, 128 }
 0x676   : > { %v1088_v27 = vmul.f32 1.442695, %v1087_v26  ;;  %v1104_v28 = vshra.s32 %v1102_v54, 16  ;;  %v1103_v31 = vand.u32 65535, %v1102_v54 }
 0x678   : > { %v1106_v29 = vcvt.s32.f32 %v1104_v28  ;;  %1368 = vpow2.f32 %v1088_v27  ;;  %v1105_v33 = vcvt.s32.f32 %v1103_v31 }
 0x67a   : > { %1107 = vmin.xlane.f32.xlu2 %v1106_v29 }
 0x67e   : > { %v1369_v30 = vpop.eup %1368 }
 0x67f   : > { %1090 = vadd.xlane.f32.xlu0 %v1369_v30 }
 0x6ed   : > { %v1108_v32 = vpop.xlane.xlu2 %1107 }
 0x6ee   : > { %vm1109_vm10 = vcmp.eq.f32.partialorder %v1106_v29, %v1108_v32  ;;  %v1114_v17 = vcvt.f32.s32 %v1108_v32 }
 0x6ef   : > { %v1110_v34 = vsel %vm1109_vm10, %v1105_v33, inf }
 0x6f0   : > { %1111 = vmin.xlane.f32.xlu2 %v1110_v34  ;;  %v1115_v39 = vshll.u32 %v1114_v17, 16 }
 0x6f2   : > { %v1091_v35 = vpop.xlane.xlu0 %1090 }
 0x6f3   : > { %1370 = vrcp.f32 %v1091_v35 }
 0x6f4   : > { %1372 = vlog2.f32 %v1091_v35 }
 0x6f9   : > { %v1371_v36 = vpop.eup %1370 }
 0x6fa   : > { %v1095_v37 = vmul.f32 %v1371_v36, %v1369_v30  ;;  %v1373_v43 = vpop.eup %1372 }
 0x6fb   : > { %v1093_v45 = vmul.f32 0.6931472, %v1373_v43 }
 0x6fc   : > { %v1097_v16 = vmul.f32 %v1095_v37, %v1084_v24 }
 0x6fd   : > { %v1096_v52 = vadd.f32 %v1093_v45, %v1086_v25 }
 0x6fe   : > { %1098 = vadd.xlane.f32.xlu2 %v1097_v16 }
 0x763   : > { %v1112_v38 = vpop.xlane.xlu2 %1111 }
 0x764   : > { %v1113_v40 = vcvt.f32.s32 %v1112_v38 }
 0x766   : > { %v1116_v41 = vadd.s32 %v1115_v39, %v1113_v40 }
 0x768   : > { %vm1117_vm11 = vcmp.eq.s32.totalorder %v1838_v47, %v1116_v41  ;;  %v1124_v51 = vcvt.s32.f32 %v1116_v41 }
 0x769   : > { %v1118_v42 = vsel %vm1117_vm11, %v1084_v24, 0.0 }
 0x76a   : > { %1119 = vadd.xlane.f32.xlu1 %v1118_v42  ;;  %v1125_v20 = vsel %vm1123_vm12, %v1124_v51, 0.0 }
 0x771   : > { %v1099_v46 = vpop.xlane.xlu2 %1098 }
 0x772   : > { %v1100_v55 = vsub.f32 %v1096_v52, %v1099_v46 }
 0x774   : > { %v1130_v44 = vsel %vm1129_vm14, %v1100_v55, 0.0 }
 0x7dd   : > { %v1120_v50 = vpop.xlane.xlu1 %1119 }
 0x7de   : > { %v1121_v53 = vsub.f32 %v1120_v50, %v1086_v25 }
 0x7e0   : > { %v1122_v56 = vsub.f32 %v1121_v53, %v1093_v45 }
 0x7e2   : > { %v1127_v0 = vsel %vm1126_vm13, %v1122_v56, 0.0 }
 0x7e3   : > { %v1128_v49 = vadd.f32 %v1127_v0, %v1125_v20 }
 0x7e5   : > { %v1131_v48 = vadd.f32 %v1130_v44, %v1128_v49 }
 0x7e7   : > { %1132 = vst [vmem:[%s386_s25] sm:$0xff] %v1131_v48 }
 0x7e8 PF: > { %s23_s29 = sadd.s32 1, %s1527_s29  }
 0x7e9   : > { %p20_p7 = scmp.ge.s32.totalorder %s23_s29, 4  }
 0x7eb   :  { %22 = sbr.rel (!%p20_p7) target bundleno = 3 (0x3), region = 102 }
 0x7f0   :  { %1152 = vsyncpa [#allocation5], 1 }
 0x7f1   :  { %1154 = vsyncpa [#allocation5 + $0x1], 1 }
 0x7f2   :  { %1155 = vsyncpa [#allocation7], 1 }
 0x7f3   :  { %1156 = vsyncpa [#allocation10], 1 }

</bundles_post_ra>
